<compile_context>
chip_gen: v6e
topology: v6e:2x2x1
jax: 0.10.0
libtpu: 0.0.40
codegen_flags: <defaults>
</compile_context>

<pallas_src>
import functools

import jax
import jax.numpy as jnp
from jax.experimental import pallas as pl
from jax.experimental.pallas import tpu as pltpu


# ---------------------------------------------------------------------------
# Pallas kernel: single fused windowed-DFT matmul + power + loss accumulation
# ---------------------------------------------------------------------------
def _sss_kernel(cs_ref, fr_ref, od_ref, ot_ref, ol_ref,
                acc_d, acc_t, acc_l, *, eps, tm, f_pad):
    i = pl.program_id(1)              # reduction axis over row tiles

    @pl.when(i == 0)
    def _():
        acc_d[...] = jnp.zeros_like(acc_d)
        acc_t[...] = jnp.zeros_like(acc_t)
        acc_l[...] = jnp.zeros_like(acc_l)

    fr = fr_ref[...]                  # (2*tm, n_fft): [true frames ; pred frames]
    cs = cs_ref[...]                  # (n_fft, 2*f_pad): windowed [cos | sin]

    # Single MXU matmul per step: real parts in lanes [:f_pad], imaginary parts
    # in lanes [f_pad:]; true rows in sublanes [:tm], pred rows in [tm:].
    re_im = jnp.dot(fr, cs, preferred_element_type=jnp.float32)  # (2*tm, 2*f_pad)
    re = re_im[:, :f_pad]
    im = re_im[:, f_pad:]
    power = re * re + im * im                                    # (2*tm, f_pad)
    st = power[:tm]                   # true power spectrogram tile
    sp = power[tm:]                   # pred power spectrogram tile

    # Element-wise accumulation only (no per-step cross-lane reductions).
    d = st - sp
    acc_d[...] += d * d
    acc_t[...] += st * st
    acc_l[...] += jnp.abs(jnp.log(st + eps) - jnp.log(sp + eps))

    @pl.when(i == pl.num_programs(1) - 1)
    def _():
        # Collapse to scalars only once per core; broadcast into a lane-dense
        # (8,128) tile so the final store is unmasked.
        od_ref[...] = jnp.full((1, 8, 128), jnp.sum(acc_d[...]), jnp.float32)
        ot_ref[...] = jnp.full((1, 8, 128), jnp.sum(acc_t[...]), jnp.float32)
        ol_ref[...] = jnp.full((1, 8, 128), jnp.sum(acc_l[...]), jnp.float32)


# ---------------------------------------------------------------------------
# Host-side helpers
# ---------------------------------------------------------------------------
def _frame_signal(x, n_fft, hop):
    # (B, T) -> (B, n_frames, n_fft); matches torch.stft / torchaudio
    # Spectrogram defaults (center=True, pad_mode='reflect', win_length=n_fft).
    p = n_fft // 2
    xp = jnp.pad(x, ((0, 0), (p, p)), mode="reflect")
    tp = xp.shape[1]
    n_frames = 1 + (tp - n_fft) // hop
    idx = jnp.arange(n_frames)[:, None] * hop + jnp.arange(n_fft)[None, :]
    return xp[:, idx]


def _windowed_dft_matrix(n_fft, f_pad):
    # Real/imag DFT bases with the periodic Hann window folded in
    # ((frames*w) @ C == frames @ (diag(w) @ C)).  The n*f product is reduced
    # mod n_fft in exact int32 before forming the angle so large n_fft does
    # not lose precision to f32 argument reduction.
    f_bins = n_fft // 2 + 1
    n_i = jnp.arange(n_fft, dtype=jnp.int32)
    f_i = jnp.arange(f_bins, dtype=jnp.int32)
    nf = (n_i[:, None] * f_i[None, :]) % n_fft
    ang = (2.0 * jnp.pi / n_fft) * nf.astype(jnp.float32)
    win = 0.5 - 0.5 * jnp.cos((2.0 * jnp.pi / n_fft) * n_i.astype(jnp.float32))
    cos_m = jnp.cos(ang) * win[:, None]
    sin_m = jnp.sin(ang) * win[:, None]
    pad = ((0, 0), (0, f_pad - f_bins))
    # Zero-padded frequency columns contribute exactly 0 to every partial sum.
    return jnp.concatenate([jnp.pad(cos_m, pad), jnp.pad(sin_m, pad)], axis=1)


def _sss_loss_scale(x_true, x_pred, n_fft, alpha, overlap, eps, *,
                    tm=128, n_split=2, compute_dtype=jnp.float32):
    hop = int(n_fft * (1 - overlap))
    min_len = min(x_true.shape[1], x_pred.shape[1])
    x_true = x_true[:, -min_len:]
    x_pred = x_pred[:, -min_len:]

    ft = _frame_signal(x_true, n_fft, hop)   # (B, Nf, n_fft)
    fp = _frame_signal(x_pred, n_fft, hop)
    b, nf, _ = ft.shape
    n_rows = b * nf
    ft = ft.reshape(n_rows, n_fft).astype(jnp.float32)
    fp = fp.reshape(n_rows, n_fft).astype(jnp.float32)

    f_bins = n_fft // 2 + 1
    f_pad = -(-f_bins // 128) * 128          # pad freq bins to a lane multiple

    # Pad the row count so every core gets the same number of full tiles.
    # Zero frames contribute 0 to every partial sum; only the l1 mean below
    # uses the true element count.
    rows_unit = tm * n_split
    n_rows_pad = -(-n_rows // rows_unit) * rows_unit
    pad_rows = n_rows_pad - n_rows
    ft = jnp.pad(ft, ((0, pad_rows), (0, 0)))
    fp = jnp.pad(fp, ((0, pad_rows), (0, 0)))

    # Stack true/pred per tile: tile t = [tm true rows ; tm pred rows] so the
    # kernel runs a single (2*tm, n_fft) @ (n_fft, 2*f_pad) matmul per step.
    n_tiles = n_rows_pad // tm
    frames = jnp.concatenate(
        [ft.reshape(n_tiles, tm, n_fft), fp.reshape(n_tiles, tm, n_fft)],
        axis=1).reshape(n_tiles * 2 * tm, n_fft).astype(compute_dtype)

    cs = _windowed_dft_matrix(n_fft, f_pad).astype(compute_dtype)

    inner = n_tiles // n_split
    grid = (n_split, inner)

    # Explicit VMEM budget: grid-invariant DFT matrix (constant index_map, so
    # it is only DMA'd once but still allocated double-buffered) +
    # double-buffered frame tiles + f32 scratch accumulators + headroom.
    item = jnp.dtype(compute_dtype).itemsize
    cs_bytes = n_fft * 2 * f_pad * item
    blk_bytes = 2 * tm * n_fft * item
    scratch_bytes = 3 * tm * f_pad * 4
    vmem_limit = int(min(max(2 * (cs_bytes + blk_bytes) + scratch_bytes
                             + (4 << 20), 32 << 20), 64 << 20))

    kernel = functools.partial(_sss_kernel, eps=eps, tm=tm, f_pad=f_pad)
    out_sds = jax.ShapeDtypeStruct((n_split, 8, 128), jnp.float32)

    sums = pl.pallas_call(
        kernel,
        out_shape=(out_sds, out_sds, out_sds),
        grid_spec=pltpu.PrefetchScalarGridSpec(
            num_scalar_prefetch=0,
            grid=grid,
            in_specs=[
                # Grid-invariant windowed [cos|sin] DFT matrix.
                pl.BlockSpec((n_fft, 2 * f_pad), lambda p, i: (0, 0)),
                # Row tiles: core p handles tiles [p*inner, (p+1)*inner).
                pl.BlockSpec((2 * tm, n_fft),
                             lambda p, i: (p * inner + i, 0)),
            ],
            out_specs=[pl.BlockSpec((1, 8, 128), lambda p, i: (p, 0, 0))] * 3,
            scratch_shapes=[pltpu.VMEM((tm, f_pad), jnp.float32)] * 3,
        ),
        compiler_params=pltpu.CompilerParams(
            dimension_semantics=("parallel", "arbitrary"),
            vmem_limit_bytes=vmem_limit),
    )(cs, frames)

    sum_sq_diff = jnp.sum(sums[0][:, 0, 0])
    sum_sq_true = jnp.sum(sums[1][:, 0, 0])
    sum_abs_log = jnp.sum(sums[2][:, 0, 0])

    count = n_rows * f_bins                  # true spectrogram element count
    converge_term = jnp.sqrt(sum_sq_diff) / (jnp.sqrt(sum_sq_true) + eps)
    log_term = sum_abs_log / count
    return converge_term + alpha * log_term


def mss_loss(x_pred, x_true, n_ffts, alpha=1.0, ratio=1.0, overlap=0.75,
             eps=1e-7, tm=128, compute_dtype=jnp.float32):
    """Multi-scale spectral loss matching MSSLoss.forward semantics.

    compute_dtype=jnp.bfloat16 enables the faster MXU path on v6e/v7x at a
    small numerics cost; default float32 matches the PyTorch reference.
    """
    x_pred = x_pred[..., :x_true.shape[-1]]
    value = 0.0
    for n_fft in n_ffts:
        value = value + _sss_loss_scale(
            x_true, x_pred, n_fft, alpha, overlap, eps,
            tm=tm, compute_dtype=compute_dtype)
    return ratio * value


if __name__ == "__main__":
    key = jax.random.PRNGKey(0)
    k1, k2 = jax.random.split(key)
    batch, seq = 2, 512
    x_pred = jax.random.normal(k1, (batch, seq), dtype=jnp.float32)
    x_true = jax.random.normal(k2, (batch, seq), dtype=jnp.float32)

    # small-scale analogue of n_ffts=[2048, 1024, 512, 256]
    n_ffts = (64, 32)
    loss_fn = jax.jit(functools.partial(mss_loss, n_ffts=n_ffts,
                                        alpha=1.0, ratio=1.0, overlap=0.75))
    loss = loss_fn(x_pred, x_true)
    jax.block_until_ready(loss)
    assert jnp.isfinite(loss)
    print("KERNEL_OK")
</pallas_src>

<mosaic_0001>
module attributes {stable_mosaic.version = 11 : i64} {
  func.func @_sss_kernel(%arg0: i32, %arg1: i32, %arg2: memref<32x256xf32, #tpu.memory_space<vmem>>, %arg3: memref<256x32xf32, #tpu.memory_space<vmem>>, %arg4: memref<1x8x128xf32, #tpu.memory_space<vmem>>, %arg5: memref<1x8x128xf32, #tpu.memory_space<vmem>>, %arg6: memref<1x8x128xf32, #tpu.memory_space<vmem>>, %arg7: memref<128x128xf32, #tpu.memory_space<vmem>>, %arg8: memref<128x128xf32, #tpu.memory_space<vmem>>, %arg9: memref<128x128xf32, #tpu.memory_space<vmem>>) attributes {dimension_semantics = [#tpu.dimension_semantics<parallel>, #tpu.dimension_semantics<arbitrary>], iteration_bounds = array<i64: 2, 1>, scalar_prefetch = 0 : i64, scratch_operands = 3 : i64, tpu.core_type = #tpu.core_type<tc>, window_params = [{pipeline_mode = #tpu.pipeline_mode<synchronous>, transform_indices = @transform_0, window_bounds = array<i64: 32, 256>}, {transform_indices = @transform_1, window_bounds = array<i64: 256, 32>}, {transform_indices = @transform_2, window_bounds = array<i64: 1, 8, 128>}, {transform_indices = @transform_3, window_bounds = array<i64: 1, 8, 128>}, {transform_indices = @transform_4, window_bounds = array<i64: 1, 8, 128>}]} {
    %c0_i32 = arith.constant 0 : i32
    %0 = arith.cmpi eq, %arg1, %c0_i32 : i32
    %1 = arith.extui %0 : i1 to i32
    %c0_i32_0 = arith.constant 0 : i32
    %2 = arith.cmpi ne, %1, %c0_i32_0 : i32
    scf.if %2 {
      %cst_20 = arith.constant 0.000000e+00 : f32
      %36 = vector.broadcast %cst_20 : f32 to vector<128x128xf32>
      %c0_21 = arith.constant 0 : index
      %c0_22 = arith.constant 0 : index
      %37 = vector.load %arg7[%c0_21, %c0_22] : memref<128x128xf32, #tpu.memory_space<vmem>>, vector<128x128xf32>
      tpu.vector_store %arg7[%c0_21, %c0_22], %36 {strides = array<i32>} : memref<128x128xf32, #tpu.memory_space<vmem>>, vector<128x128xf32>,
      %cst_23 = arith.constant 0.000000e+00 : f32
      %38 = vector.broadcast %cst_23 : f32 to vector<128x128xf32>
      %c0_24 = arith.constant 0 : index
      %c0_25 = arith.constant 0 : index
      %39 = vector.load %arg8[%c0_24, %c0_25] : memref<128x128xf32, #tpu.memory_space<vmem>>, vector<128x128xf32>
      tpu.vector_store %arg8[%c0_24, %c0_25], %38 {strides = array<i32>} : memref<128x128xf32, #tpu.memory_space<vmem>>, vector<128x128xf32>,
      %cst_26 = arith.constant 0.000000e+00 : f32
      %40 = vector.broadcast %cst_26 : f32 to vector<128x128xf32>
      %c0_27 = arith.constant 0 : index
      %c0_28 = arith.constant 0 : index
      %41 = vector.load %arg9[%c0_27, %c0_28] : memref<128x128xf32, #tpu.memory_space<vmem>>, vector<128x128xf32>
      tpu.vector_store %arg9[%c0_27, %c0_28], %40 {strides = array<i32>} : memref<128x128xf32, #tpu.memory_space<vmem>>, vector<128x128xf32>,
    } else {
    }
    %c0 = arith.constant 0 : index
    %c0_1 = arith.constant 0 : index
    %3 = vector.load %arg3[%c0, %c0_1] : memref<256x32xf32, #tpu.memory_space<vmem>>, vector<256x32xf32>
    %c0_2 = arith.constant 0 : index
    %c0_3 = arith.constant 0 : index
    %4 = vector.load %arg2[%c0_2, %c0_3] : memref<32x256xf32, #tpu.memory_space<vmem>>, vector<32x256xf32>
    %cst = arith.constant dense<0.000000e+00> : vector<256x256xf32>
    %5 = tpu.matmul %3, %4, %cst {dimension_numbers = #tpu.dot_dimension_numbers<[1], [0], [0], [1], [0, 0, 1, 1], [], []>} : vector<256x32xf32>, vector<32x256xf32>, vector<256x256xf32> -> vector<256x256xf32>
    %6 = vector.extract_strided_slice %5 {offsets = [0, 0], sizes = [256, 128], strides = [1, 1]} : vector<256x256xf32> to vector<256x128xf32>
    %7 = vector.extract_strided_slice %5 {offsets = [0, 128], sizes = [256, 128], strides = [1, 1]} : vector<256x256xf32> to vector<256x128xf32>
    %8 = arith.mulf %6, %6 : vector<256x128xf32>
    %9 = arith.mulf %7, %7 : vector<256x128xf32>
    %10 = arith.addf %8, %9 : vector<256x128xf32>
    %11 = vector.extract_strided_slice %10 {offsets = [0, 0], sizes = [128, 128], strides = [1, 1]} : vector<256x128xf32> to vector<128x128xf32>
    %12 = vector.extract_strided_slice %10 {offsets = [128, 0], sizes = [128, 128], strides = [1, 1]} : vector<256x128xf32> to vector<128x128xf32>
    %13 = arith.subf %11, %12 : vector<128x128xf32>
    %c0_4 = arith.constant 0 : index
    %c0_5 = arith.constant 0 : index
    %14 = vector.load %arg7[%c0_4, %c0_5] : memref<128x128xf32, #tpu.memory_space<vmem>>, vector<128x128xf32>
    %15 = arith.mulf %13, %13 : vector<128x128xf32>
    %16 = arith.addf %14, %15 : vector<128x128xf32>
    %c0_6 = arith.constant 0 : index
    %c0_7 = arith.constant 0 : index
    %17 = vector.load %arg7[%c0_6, %c0_7] : memref<128x128xf32, #tpu.memory_space<vmem>>, vector<128x128xf32>
    tpu.vector_store %arg7[%c0_6, %c0_7], %16 {strides = array<i32>} : memref<128x128xf32, #tpu.memory_space<vmem>>, vector<128x128xf32>,
    %c0_8 = arith.constant 0 : index
    %c0_9 = arith.constant 0 : index
    %18 = vector.load %arg8[%c0_8, %c0_9] : memref<128x128xf32, #tpu.memory_space<vmem>>, vector<128x128xf32>
    %19 = arith.mulf %11, %11 : vector<128x128xf32>
    %20 = arith.addf %18, %19 : vector<128x128xf32>
    %c0_10 = arith.constant 0 : index
    %c0_11 = arith.constant 0 : index
    %21 = vector.load %arg8[%c0_10, %c0_11] : memref<128x128xf32, #tpu.memory_space<vmem>>, vector<128x128xf32>
    tpu.vector_store %arg8[%c0_10, %c0_11], %20 {strides = array<i32>} : memref<128x128xf32, #tpu.memory_space<vmem>>, vector<128x128xf32>,
    %c0_12 = arith.constant 0 : index
    %c0_13 = arith.constant 0 : index
    %22 = vector.load %arg9[%c0_12, %c0_13] : memref<128x128xf32, #tpu.memory_space<vmem>>, vector<128x128xf32>
    %cst_14 = arith.constant 1.000000e-07 : f32
    %23 = vector.broadcast %cst_14 : f32 to vector<128x128xf32>
    %24 = arith.addf %11, %23 : vector<128x128xf32>
    %25 = math.log %24 : vector<128x128xf32>
    %cst_15 = arith.constant 1.000000e-07 : f32
    %26 = vector.broadcast %cst_15 : f32 to vector<128x128xf32>
    %27 = arith.addf %12, %26 : vector<128x128xf32>
    %28 = math.log %27 : vector<128x128xf32>
    %29 = arith.subf %25, %28 : vector<128x128xf32>
    %30 = math.absf %29 : vector<128x128xf32>
    %31 = arith.addf %22, %30 : vector<128x128xf32>
    %c0_16 = arith.constant 0 : index
    %c0_17 = arith.constant 0 : index
    %32 = vector.load %arg9[%c0_16, %c0_17] : memref<128x128xf32, #tpu.memory_space<vmem>>, vector<128x128xf32>
    tpu.vector_store %arg9[%c0_16, %c0_17], %31 {strides = array<i32>} : memref<128x128xf32, #tpu.memory_space<vmem>>, vector<128x128xf32>,
    %c0_i32_18 = arith.constant 0 : i32
    %33 = arith.cmpi eq, %arg1, %c0_i32_18 : i32
    %34 = arith.extui %33 : i1 to i32
    %c0_i32_19 = arith.constant 0 : i32
    %35 = arith.cmpi ne, %34, %c0_i32_19 : i32
    scf.if %35 {
      %c0_20 = arith.constant 0 : index
      %c0_21 = arith.constant 0 : index
      %36 = vector.load %arg7[%c0_20, %c0_21] : memref<128x128xf32, #tpu.memory_space<vmem>>, vector<128x128xf32>
      %37 = vector.shape_cast %36 : vector<128x128xf32> to vector<1x128x128xf32>
      %cst_22 = arith.constant dense<0.000000e+00> : vector<1xf32>
      %38 = vector.multi_reduction <add>, %37, %cst_22 [1, 2] : vector<1x128x128xf32> to vector<1xf32>
      %39 = vector.shape_cast %38 : vector<1xf32> to vector<1x1x1xf32>
      %40 = vector.extract %39[0, 0, 0] : f32 from vector<1x1x1xf32>
      %41 = vector.broadcast %40 : f32 to vector<1x8x128xf32>
      %c0_23 = arith.constant 0 : index
      %c0_24 = arith.constant 0 : index
      %c0_25 = arith.constant 0 : index
      %42 = vector.load %arg4[%c0_23, %c0_24, %c0_25] : memref<1x8x128xf32, #tpu.memory_space<vmem>>, vector<1x8x128xf32>
      tpu.vector_store %arg4[%c0_23, %c0_24, %c0_25], %41 {strides = array<i32>} : memref<1x8x128xf32, #tpu.memory_space<vmem>>, vector<1x8x128xf32>,
      %c0_26 = arith.constant 0 : index
      %c0_27 = arith.constant 0 : index
      %43 = vector.load %arg8[%c0_26, %c0_27] : memref<128x128xf32, #tpu.memory_space<vmem>>, vector<128x128xf32>
      %44 = vector.shape_cast %43 : vector<128x128xf32> to vector<1x128x128xf32>
      %cst_28 = arith.constant dense<0.000000e+00> : vector<1xf32>
      %45 = vector.multi_reduction <add>, %44, %cst_28 [1, 2] : vector<1x128x128xf32> to vector<1xf32>
      %46 = vector.shape_cast %45 : vector<1xf32> to vector<1x1x1xf32>
      %47 = vector.extract %46[0, 0, 0] : f32 from vector<1x1x1xf32>
      %48 = vector.broadcast %47 : f32 to vector<1x8x128xf32>
      %c0_29 = arith.constant 0 : index
      %c0_30 = arith.constant 0 : index
      %c0_31 = arith.constant 0 : index
      %49 = vector.load %arg5[%c0_29, %c0_30, %c0_31] : memref<1x8x128xf32, #tpu.memory_space<vmem>>, vector<1x8x128xf32>
      tpu.vector_store %arg5[%c0_29, %c0_30, %c0_31], %48 {strides = array<i32>} : memref<1x8x128xf32, #tpu.memory_space<vmem>>, vector<1x8x128xf32>,
      %c0_32 = arith.constant 0 : index
      %c0_33 = arith.constant 0 : index
      %50 = vector.load %arg9[%c0_32, %c0_33] : memref<128x128xf32, #tpu.memory_space<vmem>>, vector<128x128xf32>
      %51 = vector.shape_cast %50 : vector<128x128xf32> to vector<1x128x128xf32>
      %cst_34 = arith.constant dense<0.000000e+00> : vector<1xf32>
      %52 = vector.multi_reduction <add>, %51, %cst_34 [1, 2] : vector<1x128x128xf32> to vector<1xf32>
      %53 = vector.shape_cast %52 : vector<1xf32> to vector<1x1x1xf32>
      %54 = vector.extract %53[0, 0, 0] : f32 from vector<1x1x1xf32>
      %55 = vector.broadcast %54 : f32 to vector<1x8x128xf32>
      %c0_35 = arith.constant 0 : index
      %c0_36 = arith.constant 0 : index
      %c0_37 = arith.constant 0 : index
      %56 = vector.load %arg6[%c0_35, %c0_36, %c0_37] : memref<1x8x128xf32, #tpu.memory_space<vmem>>, vector<1x8x128xf32>
      tpu.vector_store %arg6[%c0_35, %c0_36, %c0_37], %55 {strides = array<i32>} : memref<1x8x128xf32, #tpu.memory_space<vmem>>, vector<1x8x128xf32>,
    } else {
    }
    return
  }
  func.func @transform_0(%arg0: i32, %arg1: i32) -> (i32, i32) {
    %c0_i32 = arith.constant 0 : i32
    %c0_i32_0 = arith.constant 0 : i32
    %c0_i32_1 = arith.constant 0 : i32
    return %c0_i32, %c0_i32_0 : i32, i32
  }
  func.func @transform_1(%arg0: i32, %arg1: i32) -> (i32, i32) {
    %c1_i32 = arith.constant 1 : i32
    %0 = arith.muli %arg0, %c1_i32 : i32
    %1 = arith.addi %0, %arg1 : i32
    %c0_i32 = arith.constant 0 : i32
    %c0_i32_0 = arith.constant 0 : i32
    return %1, %c0_i32 : i32, i32
  }
  func.func @transform_2(%arg0: i32, %arg1: i32) -> (i32, i32, i32) {
    %c0_i32 = arith.constant 0 : i32
    %c0_i32_0 = arith.constant 0 : i32
    %c0_i32_1 = arith.constant 0 : i32
    return %arg0, %c0_i32, %c0_i32_0 : i32, i32, i32
  }
  func.func @transform_3(%arg0: i32, %arg1: i32) -> (i32, i32, i32) {
    %c0_i32 = arith.constant 0 : i32
    %c0_i32_0 = arith.constant 0 : i32
    %c0_i32_1 = arith.constant 0 : i32
    return %arg0, %c0_i32, %c0_i32_0 : i32, i32, i32
  }
  func.func @transform_4(%arg0: i32, %arg1: i32) -> (i32, i32, i32) {
    %c0_i32 = arith.constant 0 : i32
    %c0_i32_0 = arith.constant 0 : i32
    %c0_i32_1 = arith.constant 0 : i32
    return %arg0, %c0_i32, %c0_i32_0 : i32, i32, i32
  }
}

module attributes {stable_mosaic.version = 11 : i64} {
  func.func @_sss_kernel(%arg0: i32, %arg1: i32, %arg2: memref<64x256xf32, #tpu.memory_space<vmem>>, %arg3: memref<256x64xf32, #tpu.memory_space<vmem>>, %arg4: memref<1x8x128xf32, #tpu.memory_space<vmem>>, %arg5: memref<1x8x128xf32, #tpu.memory_space<vmem>>, %arg6: memref<1x8x128xf32, #tpu.memory_space<vmem>>, %arg7: memref<128x128xf32, #tpu.memory_space<vmem>>, %arg8: memref<128x128xf32, #tpu.memory_space<vmem>>, %arg9: memref<128x128xf32, #tpu.memory_space<vmem>>) attributes {dimension_semantics = [#tpu.dimension_semantics<parallel>, #tpu.dimension_semantics<arbitrary>], iteration_bounds = array<i64: 2, 1>, scalar_prefetch = 0 : i64, scratch_operands = 3 : i64, tpu.core_type = #tpu.core_type<tc>, window_params = [{pipeline_mode = #tpu.pipeline_mode<synchronous>, transform_indices = @transform_0, window_bounds = array<i64: 64, 256>}, {transform_indices = @transform_1, window_bounds = array<i64: 256, 64>}, {transform_indices = @transform_2, window_bounds = array<i64: 1, 8, 128>}, {transform_indices = @transform_3, window_bounds = array<i64: 1, 8, 128>}, {transform_indices = @transform_4, window_bounds = array<i64: 1, 8, 128>}]} {
    %c0_i32 = arith.constant 0 : i32
    %0 = arith.cmpi eq, %arg1, %c0_i32 : i32
    %1 = arith.extui %0 : i1 to i32
    %c0_i32_0 = arith.constant 0 : i32
    %2 = arith.cmpi ne, %1, %c0_i32_0 : i32
    scf.if %2 {
      %cst_20 = arith.constant 0.000000e+00 : f32
      %36 = vector.broadcast %cst_20 : f32 to vector<128x128xf32>
      %c0_21 = arith.constant 0 : index
      %c0_22 = arith.constant 0 : index
      %37 = vector.load %arg7[%c0_21, %c0_22] : memref<128x128xf32, #tpu.memory_space<vmem>>, vector<128x128xf32>
      tpu.vector_store %arg7[%c0_21, %c0_22], %36 {strides = array<i32>} : memref<128x128xf32, #tpu.memory_space<vmem>>, vector<128x128xf32>,
      %cst_23 = arith.constant 0.000000e+00 : f32
      %38 = vector.broadcast %cst_23 : f32 to vector<128x128xf32>
      %c0_24 = arith.constant 0 : index
      %c0_25 = arith.constant 0 : index
      %39 = vector.load %arg8[%c0_24, %c0_25] : memref<128x128xf32, #tpu.memory_space<vmem>>, vector<128x128xf32>
      tpu.vector_store %arg8[%c0_24, %c0_25], %38 {strides = array<i32>} : memref<128x128xf32, #tpu.memory_space<vmem>>, vector<128x128xf32>,
      %cst_26 = arith.constant 0.000000e+00 : f32
      %40 = vector.broadcast %cst_26 : f32 to vector<128x128xf32>
      %c0_27 = arith.constant 0 : index
      %c0_28 = arith.constant 0 : index
      %41 = vector.load %arg9[%c0_27, %c0_28] : memref<128x128xf32, #tpu.memory_space<vmem>>, vector<128x128xf32>
      tpu.vector_store %arg9[%c0_27, %c0_28], %40 {strides = array<i32>} : memref<128x128xf32, #tpu.memory_space<vmem>>, vector<128x128xf32>,
    } else {
    }
    %c0 = arith.constant 0 : index
    %c0_1 = arith.constant 0 : index
    %3 = vector.load %arg3[%c0, %c0_1] : memref<256x64xf32, #tpu.memory_space<vmem>>, vector<256x64xf32>
    %c0_2 = arith.constant 0 : index
    %c0_3 = arith.constant 0 : index
    %4 = vector.load %arg2[%c0_2, %c0_3] : memref<64x256xf32, #tpu.memory_space<vmem>>, vector<64x256xf32>
    %cst = arith.constant dense<0.000000e+00> : vector<256x256xf32>
    %5 = tpu.matmul %3, %4, %cst {dimension_numbers = #tpu.dot_dimension_numbers<[1], [0], [0], [1], [0, 0, 1, 1], [], []>} : vector<256x64xf32>, vector<64x256xf32>, vector<256x256xf32> -> vector<256x256xf32>
    %6 = vector.extract_strided_slice %5 {offsets = [0, 0], sizes = [256, 128], strides = [1, 1]} : vector<256x256xf32> to vector<256x128xf32>
    %7 = vector.extract_strided_slice %5 {offsets = [0, 128], sizes = [256, 128], strides = [1, 1]} : vector<256x256xf32> to vector<256x128xf32>
    %8 = arith.mulf %6, %6 : vector<256x128xf32>
    %9 = arith.mulf %7, %7 : vector<256x128xf32>
    %10 = arith.addf %8, %9 : vector<256x128xf32>
    %11 = vector.extract_strided_slice %10 {offsets = [0, 0], sizes = [128, 128], strides = [1, 1]} : vector<256x128xf32> to vector<128x128xf32>
    %12 = vector.extract_strided_slice %10 {offsets = [128, 0], sizes = [128, 128], strides = [1, 1]} : vector<256x128xf32> to vector<128x128xf32>
    %13 = arith.subf %11, %12 : vector<128x128xf32>
    %c0_4 = arith.constant 0 : index
    %c0_5 = arith.constant 0 : index
    %14 = vector.load %arg7[%c0_4, %c0_5] : memref<128x128xf32, #tpu.memory_space<vmem>>, vector<128x128xf32>
    %15 = arith.mulf %13, %13 : vector<128x128xf32>
    %16 = arith.addf %14, %15 : vector<128x128xf32>
    %c0_6 = arith.constant 0 : index
    %c0_7 = arith.constant 0 : index
    %17 = vector.load %arg7[%c0_6, %c0_7] : memref<128x128xf32, #tpu.memory_space<vmem>>, vector<128x128xf32>
    tpu.vector_store %arg7[%c0_6, %c0_7], %16 {strides = array<i32>} : memref<128x128xf32, #tpu.memory_space<vmem>>, vector<128x128xf32>,
    %c0_8 = arith.constant 0 : index
    %c0_9 = arith.constant 0 : index
    %18 = vector.load %arg8[%c0_8, %c0_9] : memref<128x128xf32, #tpu.memory_space<vmem>>, vector<128x128xf32>
    %19 = arith.mulf %11, %11 : vector<128x128xf32>
    %20 = arith.addf %18, %19 : vector<128x128xf32>
    %c0_10 = arith.constant 0 : index
    %c0_11 = arith.constant 0 : index
    %21 = vector.load %arg8[%c0_10, %c0_11] : memref<128x128xf32, #tpu.memory_space<vmem>>, vector<128x128xf32>
    tpu.vector_store %arg8[%c0_10, %c0_11], %20 {strides = array<i32>} : memref<128x128xf32, #tpu.memory_space<vmem>>, vector<128x128xf32>,
    %c0_12 = arith.constant 0 : index
    %c0_13 = arith.constant 0 : index
    %22 = vector.load %arg9[%c0_12, %c0_13] : memref<128x128xf32, #tpu.memory_space<vmem>>, vector<128x128xf32>
    %cst_14 = arith.constant 1.000000e-07 : f32
    %23 = vector.broadcast %cst_14 : f32 to vector<128x128xf32>
    %24 = arith.addf %11, %23 : vector<128x128xf32>
    %25 = math.log %24 : vector<128x128xf32>
    %cst_15 = arith.constant 1.000000e-07 : f32
    %26 = vector.broadcast %cst_15 : f32 to vector<128x128xf32>
    %27 = arith.addf %12, %26 : vector<128x128xf32>
    %28 = math.log %27 : vector<128x128xf32>
    %29 = arith.subf %25, %28 : vector<128x128xf32>
    %30 = math.absf %29 : vector<128x128xf32>
    %31 = arith.addf %22, %30 : vector<128x128xf32>
    %c0_16 = arith.constant 0 : index
    %c0_17 = arith.constant 0 : index
    %32 = vector.load %arg9[%c0_16, %c0_17] : memref<128x128xf32, #tpu.memory_space<vmem>>, vector<128x128xf32>
    tpu.vector_store %arg9[%c0_16, %c0_17], %31 {strides = array<i32>} : memref<128x128xf32, #tpu.memory_space<vmem>>, vector<128x128xf32>,
    %c0_i32_18 = arith.constant 0 : i32
    %33 = arith.cmpi eq, %arg1, %c0_i32_18 : i32
    %34 = arith.extui %33 : i1 to i32
    %c0_i32_19 = arith.constant 0 : i32
    %35 = arith.cmpi ne, %34, %c0_i32_19 : i32
    scf.if %35 {
      %c0_20 = arith.constant 0 : index
      %c0_21 = arith.constant 0 : index
      %36 = vector.load %arg7[%c0_20, %c0_21] : memref<128x128xf32, #tpu.memory_space<vmem>>, vector<128x128xf32>
      %37 = vector.shape_cast %36 : vector<128x128xf32> to vector<1x128x128xf32>
      %cst_22 = arith.constant dense<0.000000e+00> : vector<1xf32>
      %38 = vector.multi_reduction <add>, %37, %cst_22 [1, 2] : vector<1x128x128xf32> to vector<1xf32>
      %39 = vector.shape_cast %38 : vector<1xf32> to vector<1x1x1xf32>
      %40 = vector.extract %39[0, 0, 0] : f32 from vector<1x1x1xf32>
      %41 = vector.broadcast %40 : f32 to vector<1x8x128xf32>
      %c0_23 = arith.constant 0 : index
      %c0_24 = arith.constant 0 : index
      %c0_25 = arith.constant 0 : index
      %42 = vector.load %arg4[%c0_23, %c0_24, %c0_25] : memref<1x8x128xf32, #tpu.memory_space<vmem>>, vector<1x8x128xf32>
      tpu.vector_store %arg4[%c0_23, %c0_24, %c0_25], %41 {strides = array<i32>} : memref<1x8x128xf32, #tpu.memory_space<vmem>>, vector<1x8x128xf32>,
      %c0_26 = arith.constant 0 : index
      %c0_27 = arith.constant 0 : index
      %43 = vector.load %arg8[%c0_26, %c0_27] : memref<128x128xf32, #tpu.memory_space<vmem>>, vector<128x128xf32>
      %44 = vector.shape_cast %43 : vector<128x128xf32> to vector<1x128x128xf32>
      %cst_28 = arith.constant dense<0.000000e+00> : vector<1xf32>
      %45 = vector.multi_reduction <add>, %44, %cst_28 [1, 2] : vector<1x128x128xf32> to vector<1xf32>
      %46 = vector.shape_cast %45 : vector<1xf32> to vector<1x1x1xf32>
      %47 = vector.extract %46[0, 0, 0] : f32 from vector<1x1x1xf32>
      %48 = vector.broadcast %47 : f32 to vector<1x8x128xf32>
      %c0_29 = arith.constant 0 : index
      %c0_30 = arith.constant 0 : index
      %c0_31 = arith.constant 0 : index
      %49 = vector.load %arg5[%c0_29, %c0_30, %c0_31] : memref<1x8x128xf32, #tpu.memory_space<vmem>>, vector<1x8x128xf32>
      tpu.vector_store %arg5[%c0_29, %c0_30, %c0_31], %48 {strides = array<i32>} : memref<1x8x128xf32, #tpu.memory_space<vmem>>, vector<1x8x128xf32>,
      %c0_32 = arith.constant 0 : index
      %c0_33 = arith.constant 0 : index
      %50 = vector.load %arg9[%c0_32, %c0_33] : memref<128x128xf32, #tpu.memory_space<vmem>>, vector<128x128xf32>
      %51 = vector.shape_cast %50 : vector<128x128xf32> to vector<1x128x128xf32>
      %cst_34 = arith.constant dense<0.000000e+00> : vector<1xf32>
      %52 = vector.multi_reduction <add>, %51, %cst_34 [1, 2] : vector<1x128x128xf32> to vector<1xf32>
      %53 = vector.shape_cast %52 : vector<1xf32> to vector<1x1x1xf32>
      %54 = vector.extract %53[0, 0, 0] : f32 from vector<1x1x1xf32>
      %55 = vector.broadcast %54 : f32 to vector<1x8x128xf32>
      %c0_35 = arith.constant 0 : index
      %c0_36 = arith.constant 0 : index
      %c0_37 = arith.constant 0 : index
      %56 = vector.load %arg6[%c0_35, %c0_36, %c0_37] : memref<1x8x128xf32, #tpu.memory_space<vmem>>, vector<1x8x128xf32>
      tpu.vector_store %arg6[%c0_35, %c0_36, %c0_37], %55 {strides = array<i32>} : memref<1x8x128xf32, #tpu.memory_space<vmem>>, vector<1x8x128xf32>,
    } else {
    }
    return
  }
  func.func @transform_0(%arg0: i32, %arg1: i32) -> (i32, i32) {
    %c0_i32 = arith.constant 0 : i32
    %c0_i32_0 = arith.constant 0 : i32
    %c0_i32_1 = arith.constant 0 : i32
    return %c0_i32, %c0_i32_0 : i32, i32
  }
  func.func @transform_1(%arg0: i32, %arg1: i32) -> (i32, i32) {
    %c1_i32 = arith.constant 1 : i32
    %0 = arith.muli %arg0, %c1_i32 : i32
    %1 = arith.addi %0, %arg1 : i32
    %c0_i32 = arith.constant 0 : i32
    %c0_i32_0 = arith.constant 0 : i32
    return %1, %c0_i32 : i32, i32
  }
  func.func @transform_2(%arg0: i32, %arg1: i32) -> (i32, i32, i32) {
    %c0_i32 = arith.constant 0 : i32
    %c0_i32_0 = arith.constant 0 : i32
    %c0_i32_1 = arith.constant 0 : i32
    return %arg0, %c0_i32, %c0_i32_0 : i32, i32, i32
  }
  func.func @transform_3(%arg0: i32, %arg1: i32) -> (i32, i32, i32) {
    %c0_i32 = arith.constant 0 : i32
    %c0_i32_0 = arith.constant 0 : i32
    %c0_i32_1 = arith.constant 0 : i32
    return %arg0, %c0_i32, %c0_i32_0 : i32, i32, i32
  }
  func.func @transform_4(%arg0: i32, %arg1: i32) -> (i32, i32, i32) {
    %c0_i32 = arith.constant 0 : i32
    %c0_i32_0 = arith.constant 0 : i32
    %c0_i32_1 = arith.constant 0 : i32
    return %arg0, %c0_i32, %c0_i32_0 : i32, i32, i32
  }
}

</mosaic_0001>

<bundles_post_ra>
// kernel: mss_loss.3
= control target key start
LH: loop header
LB: loop body
LE: loop exit
PB: predicated region body
PF: predicated region fallthrough
CT: control target
= control target key end

     0   :  { %s1549_s15 = smov 0   ;;  %s1551_s16 = smov 0   ;;  %s1743_s0 = inlined_call_operand.vmem [shape: f32[32,256], index: 0, kind: input, shape index: {}]   ;;  %s1744_s1 = inlined_call_operand.vmem [shape: f32[512,32], index: 1, kind: input, shape index: {}]   ;;  %s1745_s2 = inlined_call_operand.vmem [shape: f32[2,8,128], index: 2, kind: output, shape index: {0}]   ;;  %s1746_s3 = inlined_call_operand.vmem [shape: f32[2,8,128], index: 3, kind: output, shape index: {1}]   ;;  %s1747_s4 = inlined_call_operand.vmem [shape: f32[2,8,128], index: 4, kind: output, shape index: {2}]  }
   0x1   :  { %s1553_s17 = smov 0  }
   0x2 LB: > { %s27_s18 = sadd.s32 1, %s1517_s16  ;;  %p1356_p0 = scmp.ge.s32.totalorder %s1521_s17, 1  ;;  %s1521_s17 = sphi %s1553_s17, %s15_s17   ;;  %s1517_s16 = sphi %s1551_s16, %s1749_s16   ;;  %s1513_s15 = sphi %s1549_s15, %s1748_s15  }
   0x3   : > { %p29_p1 = scmp.ge.s32.totalorder %s27_s18, 2  ;;  %p184_p2 = scmp.lt.s32.totalorder %s1521_s17, 3 }
   0x5   : > { %s1751_s18 = smov (%p29_p1, %s27_s18), 0  ;;  %p185_p3 = pnand %p1356_p0, %p184_p2 }
   0x6   : > { %s1357_s25 = sshll.u32 (!%p185_p3), %s1513_s15, 5  ;;  %p226_p5 = scmp.lt.s32.totalorder (!%p185_p3), %s1513_s15, 1 }
   0x7   : > { %188 = sbr.rel (%p185_p3) target bundleno = 514 (0x202), region = 28  ;;  %p220_p4 = scmp.lt.s32.totalorder (!%p185_p3), %s1357_s25, 63 }
   0xc   : > { %v329_v0 = vld [vmem:[%s1743_s0 + $0x38] sm:$0xff]  ;;  %v328_v1 = vld [vmem:[%s1743_s0 + $0x30] sm:$0xff]  ;;  %v327_v2 = vld [vmem:[%s1743_s0 + $0x28] sm:$0xff]  ;;  %s1753_s25 = smov (!%p220_p4, %s1357_s25), 63  ;;  %vm330_vm0 = vcmask 261120   ;;  %v1523_v10 = vmov 0.0  }
   0xd   : > { %451 = vmatprep.subr.mxu0 %v329_v0  ;;  %1396 = vmatprep.subr.mxu1 %v329_v0  ;;  %v326_v3 = vld [vmem:[%s1743_s0 + $0x20] sm:$0xff]  ;;  %v325_v4 = vld [vmem:[%s1743_s0 + $0x18] sm:$0xff]  ;;  %v324_v5 = vld [vmem:[%s1743_s0 + $0x10] sm:$0xff]  ;;  %s1358_s10 = sshll.u32 %s1753_s25, 3  ;;  %s1755_s15 = smov (!%p226_p5, %s1513_s15), 1 }
   0xe   : > { %452 = vmatpush1.msra.mxu0 %v328_v1  ;;  %1400 = vmatpush1.msra.mxu1 %v328_v1  ;;  %v323_v6 = vld [vmem:[%s1743_s0 + $0x8] sm:$0xff]  ;;  %v322_v7 = vld [vmem:[%s1743_s0] sm:$0xff]  ;;  %s1597_s13 = scalar_lea.vmem %s1744_s1, %s1358_s10  ;;  %s1359_s14 = sshll.u32 %s1755_s15, 3 }
   0xf   : > { %453 = vmatprep.subr.mxu0 %v327_v2  ;;  %1397 = vmatprep.subr.mxu1 %v327_v2  ;;  %v290_v8 = vld [vmem:[%s1597_s13] sm:$0xff]  ;;  %v291_v11 = vld [vmem:[%s1597_s13 + $0x8] sm:$0xff]  ;;  %v292_v13 = vld [vmem:[%s1597_s13 + $0x10] sm:$0xff]  ;;  %s229_s21 = scalar_lea.vmem %s1745_s2, %s1359_s14  ;;  %s233_s25 = scalar_lea.vmem %s1746_s3, %s1359_s14 }
  0x10   : > { %454 = vmatpush1.msra.mxu0 %v326_v3  ;;  %1401 = vmatpush1.msra.mxu1 %v326_v3  ;;  %v306_v9 = vld [vmem:[%s1597_s13 + $0x80] sm:$0xff]  ;;  %v307_v12 = vld [vmem:[%s1597_s13 + $0x88] sm:$0xff]  ;;  %v308_v14 = vld [vmem:[%s1597_s13 + $0x90] sm:$0xff]  ;;  %s237_s29 = scalar_lea.vmem %s1747_s4, %s1359_s14 }
  0x11   : > { %455 = vmatprep.subr.mxu0 %v325_v4  ;;  %1398 = vmatprep.subr.mxu1 %v325_v4  ;;  %v293_v15 = vld [vmem:[%s1597_s13 + $0x18] sm:$0xff]  ;;  %v294_v17 = vld [vmem:[%s1597_s13 + $0x20] sm:$0xff]  ;;  %v295_v19 = vld [vmem:[%s1597_s13 + $0x28] sm:$0xff] }
  0x12   : > { %456 = vmatpush1.msra.mxu0 %v324_v5  ;;  %1402 = vmatpush1.msra.mxu1 %v324_v5  ;;  %v309_v16 = vld [vmem:[%s1597_s13 + $0x98] sm:$0xff]  ;;  %v310_v18 = vld [vmem:[%s1597_s13 + $0xa0] sm:$0xff]  ;;  %v311_v20 = vld [vmem:[%s1597_s13 + $0xa8] sm:$0xff] }
  0x13   : > { %457 = vmatprep.subr.mxu0 %v323_v6  ;;  %1399 = vmatprep.subr.mxu1 %v323_v6  ;;  %v296_v21 = vld [vmem:[%s1597_s13 + $0x30] sm:$0xff]  ;;  %v297_v23 = vld [vmem:[%s1597_s13 + $0x38] sm:$0xff]  ;;  %v298_v25 = vld [vmem:[%s1597_s13 + $0x40] sm:$0xff] }
  0x14   : > { %458 = vmatpush1.msra.mxu0 %v322_v7  ;;  %1403 = vmatpush1.msra.mxu1 %v322_v7  ;;  %v312_v22 = vld [vmem:[%s1597_s13 + $0xb0] sm:$0xff]  ;;  %v313_v24 = vld [vmem:[%s1597_s13 + $0xb8] sm:$0xff]  ;;  %v314_v26 = vld [vmem:[%s1597_s13 + $0xc0] sm:$0xff] }
  0x15   : > { %491 = vmatprep.mubr.f32.mxu0 %v1523_v10  ;;  %587 = vmatprep.mubr.f32.mxu1 %v1523_v10  ;;  %v299_v27 = vld [vmem:[%s1597_s13 + $0x48] sm:$0xff]  ;;  %v300_v29 = vld [vmem:[%s1597_s13 + $0x50] sm:$0xff]  ;;  %v301_v31 = vld [vmem:[%s1597_s13 + $0x58] sm:$0xff] }
  0x16   : > { %1362 = vmatmul.mubr.msk.f32.vlgmr.msra.gmra.mxu0 %vm330_vm0, %v290_v8  ;;  %1378 = vmatmul.mubr.msk.f32.vlgmr.msra.gmra.mxu1 %vm330_vm0, %v306_v9  ;;  %v315_v28 = vld [vmem:[%s1597_s13 + $0xc8] sm:$0xff]  ;;  %v316_v30 = vld [vmem:[%s1597_s13 + $0xd0] sm:$0xff]  ;;  %v317_v32 = vld [vmem:[%s1597_s13 + $0xd8] sm:$0xff] }
  0x17   : > { %497 = vmatprep.mubr.f32.mxu0 %v1523_v10  ;;  %593 = vmatprep.mubr.f32.mxu1 %v1523_v10  ;;  %v302_v33 = vld [vmem:[%s1597_s13 + $0x60] sm:$0xff]  ;;  %v303_v35 = vld [vmem:[%s1597_s13 + $0x68] sm:$0xff]  ;;  %v304_v37 = vld [vmem:[%s1597_s13 + $0x70] sm:$0xff] }
  0x18   : > { %v318_v34 = vld [vmem:[%s1597_s13 + $0xe0] sm:$0xff]  ;;  %v319_v36 = vld [vmem:[%s1597_s13 + $0xe8] sm:$0xff]  ;;  %v320_v38 = vld [vmem:[%s1597_s13 + $0xf0] sm:$0xff] }
  0x19   : > { %v305_v39 = vld [vmem:[%s1597_s13 + $0x78] sm:$0xff] }
  0x1a   : > { %1363 = vmatmul.mubr.msk.f32.gmra.mxu0 %vm330_vm0, %v291_v11  ;;  %1379 = vmatmul.mubr.msk.f32.gmra.mxu1 %vm330_vm0, %v307_v12  ;;  %v321_v40 = vld [vmem:[%s1597_s13 + $0xf8] sm:$0xff] }
  0x1b   : > { %503 = vmatprep.mubr.f32.mxu0 %v1523_v10  ;;  %599 = vmatprep.mubr.f32.mxu1 %v1523_v10 }
  0x1e   : > { %1364 = vmatmul.mubr.msk.f32.gmra.mxu0 %vm330_vm0, %v292_v13  ;;  %1380 = vmatmul.mubr.msk.f32.gmra.mxu1 %vm330_vm0, %v308_v14 }
  0x1f   : > { %509 = vmatprep.mubr.f32.mxu0 %v1523_v10  ;;  %605 = vmatprep.mubr.f32.mxu1 %v1523_v10 }
  0x22   : > { %1365 = vmatmul.mubr.msk.f32.gmra.mxu0 %vm330_vm0, %v293_v15  ;;  %1381 = vmatmul.mubr.msk.f32.gmra.mxu1 %vm330_vm0, %v309_v16 }
  0x23   : > { %515 = vmatprep.mubr.f32.mxu0 %v1523_v10  ;;  %611 = vmatprep.mubr.f32.mxu1 %v1523_v10 }
  0x26   : > { %1366 = vmatmul.mubr.msk.f32.gmra.mxu0 %vm330_vm0, %v294_v17  ;;  %1382 = vmatmul.mubr.msk.f32.gmra.mxu1 %vm330_vm0, %v310_v18 }
  0x27   : > { %521 = vmatprep.mubr.f32.mxu0 %v1523_v10  ;;  %617 = vmatprep.mubr.f32.mxu1 %v1523_v10 }
  0x2a   : > { %1367 = vmatmul.mubr.msk.f32.gmra.mxu0 %vm330_vm0, %v295_v19  ;;  %1383 = vmatmul.mubr.msk.f32.gmra.mxu1 %vm330_vm0, %v311_v20 }
  0x2b   : > { %527 = vmatprep.mubr.f32.mxu0 %v1523_v10  ;;  %623 = vmatprep.mubr.f32.mxu1 %v1523_v10 }
  0x2e   : > { %1368 = vmatmul.mubr.msk.f32.gmra.mxu0 %vm330_vm0, %v296_v21  ;;  %1384 = vmatmul.mubr.msk.f32.gmra.mxu1 %vm330_vm0, %v312_v22 }
  0x2f   : > { %533 = vmatprep.mubr.f32.mxu0 %v1523_v10  ;;  %629 = vmatprep.mubr.f32.mxu1 %v1523_v10 }
  0x32   : > { %1369 = vmatmul.mubr.msk.f32.gmra.mxu0 %vm330_vm0, %v297_v23  ;;  %1385 = vmatmul.mubr.msk.f32.gmra.mxu1 %vm330_vm0, %v313_v24 }
  0x33   : > { %539 = vmatprep.mubr.f32.mxu0 %v1523_v10  ;;  %635 = vmatprep.mubr.f32.mxu1 %v1523_v10 }
  0x36   : > { %1370 = vmatmul.mubr.msk.f32.gmra.mxu0 %vm330_vm0, %v298_v25  ;;  %1386 = vmatmul.mubr.msk.f32.gmra.mxu1 %vm330_vm0, %v314_v26 }
  0x37   : > { %545 = vmatprep.mubr.f32.mxu0 %v1523_v10  ;;  %641 = vmatprep.mubr.f32.mxu1 %v1523_v10 }
  0x3a   : > { %1371 = vmatmul.mubr.msk.f32.gmra.mxu0 %vm330_vm0, %v299_v27  ;;  %1387 = vmatmul.mubr.msk.f32.gmra.mxu1 %vm330_vm0, %v315_v28 }
  0x3b   : > { %551 = vmatprep.mubr.f32.mxu0 %v1523_v10  ;;  %647 = vmatprep.mubr.f32.mxu1 %v1523_v10 }
  0x3e   : > { %1372 = vmatmul.mubr.msk.f32.gmra.mxu0 %vm330_vm0, %v300_v29  ;;  %1388 = vmatmul.mubr.msk.f32.gmra.mxu1 %vm330_vm0, %v316_v30 }
  0x3f   : > { %557 = vmatprep.mubr.f32.mxu0 %v1523_v10  ;;  %653 = vmatprep.mubr.f32.mxu1 %v1523_v10 }
  0x42   : > { %1373 = vmatmul.mubr.msk.f32.gmra.mxu0 %vm330_vm0, %v301_v31  ;;  %1389 = vmatmul.mubr.msk.f32.gmra.mxu1 %vm330_vm0, %v317_v32 }
  0x43   : > { %563 = vmatprep.mubr.f32.mxu0 %v1523_v10  ;;  %659 = vmatprep.mubr.f32.mxu1 %v1523_v10 }
  0x46   : > { %1374 = vmatmul.mubr.msk.f32.gmra.mxu0 %vm330_vm0, %v302_v33  ;;  %1390 = vmatmul.mubr.msk.f32.gmra.mxu1 %vm330_vm0, %v318_v34 }
  0x47   : > { %569 = vmatprep.mubr.f32.mxu0 %v1523_v10  ;;  %665 = vmatprep.mubr.f32.mxu1 %v1523_v10 }
  0x4a   : > { %1375 = vmatmul.mubr.msk.f32.gmra.mxu0 %vm330_vm0, %v303_v35  ;;  %1391 = vmatmul.mubr.msk.f32.gmra.mxu1 %vm330_vm0, %v319_v36 }
  0x4b   : > { %575 = vmatprep.mubr.f32.mxu0 %v1523_v10  ;;  %671 = vmatprep.mubr.f32.mxu1 %v1523_v10 }
  0x4e   : > { %1376 = vmatmul.mubr.msk.f32.gmra.mxu0 %vm330_vm0, %v304_v37  ;;  %1392 = vmatmul.mubr.msk.f32.gmra.mxu1 %vm330_vm0, %v320_v38 }
  0x4f   : > { %581 = vmatprep.mubr.f32.mxu0 %v1523_v10  ;;  %677 = vmatprep.mubr.f32.mxu1 %v1523_v10 }
  0x52   : > { %1377 = vmatmul.mubr.msk.f32.gmra.mxu0 %vm330_vm0, %v305_v39  ;;  %1393 = vmatmul.mubr.msk.f32.gmra.mxu1 %vm330_vm0, %v321_v40 }
  0xd6   : > { %v493_v41 = vpop.f32.mrf.mxu0  ;;  %v589_v42 = vpop.f32.mrf.mxu1 }
  0xd7   : > { %v684_v45 = vmul.f32 %v493_v41, %v493_v41  ;;  %v700_v46 = vmul.f32 %v589_v42, %v589_v42 }
  0xd8   : > { %v495_v43 = vpop.f32.mrf.mxu0  ;;  %v591_v44 = vpop.f32.mrf.mxu1 }
  0xd9   : > { %v716_v47 = vmul.f32 %v495_v43, %v495_v43  ;;  %v732_v48 = vmul.f32 %v591_v44, %v591_v44 }
  0xda   : > { %v499_v49 = vpop.f32.mrf.mxu0  ;;  %v595_v50 = vpop.f32.mrf.mxu1 }
  0xdb   : > { %v748_v51 = vadd.f32 %v716_v47, %v684_v45  ;;  %v764_v52 = vadd.f32 %v732_v48, %v700_v46  ;;  %v685_v56 = vmul.f32 %v499_v49, %v499_v49  ;;  %v701_v58 = vmul.f32 %v595_v50, %v595_v50 }
  0xdc   : > { %v501_v53 = vpop.f32.mrf.mxu0  ;;  %v597_v54 = vpop.f32.mrf.mxu1 }
  0xdd   : > { %v940_v55 = vadd.f32 1e-07, %v748_v51  ;;  %v988_v57 = vadd.f32 1e-07, %v764_v52  ;;  %v717_v59 = vmul.f32 %v501_v53, %v501_v53  ;;  %v733_v60 = vmul.f32 %v597_v54, %v597_v54 }
  0xde   : > { %v505_v61 = vpop.f32.mrf.mxu0  ;;  %v601_v62 = vpop.f32.mrf.mxu1  ;;  %v780_v24 = vsub.f32 %v748_v51, %v764_v52  ;;  %v876_v36 = vmul.f32 %v748_v51, %v748_v51 }
  0xdf   : > { %1435 = vlog2.f32 %v940_v55  ;;  %v749_v63 = vadd.f32 %v717_v59, %v685_v56  ;;  %v765_v0 = vadd.f32 %v733_v60, %v701_v58  ;;  %v686_v3 = vmul.f32 %v505_v61, %v505_v61 }
  0xe0   : > { %v507_v1 = vpop.f32.mrf.mxu0  ;;  %v603_v2 = vpop.f32.mrf.mxu1  ;;  %v702_v4 = vmul.f32 %v601_v62, %v601_v62  ;;  %1437 = vlog2.f32 %v988_v57  ;;  %v812_v42 = vmul.f32 %v780_v24, %v780_v24 }
  0xe1   : > { %v718_v5 = vmul.f32 %v507_v1, %v507_v1  ;;  %v734_v6 = vmul.f32 %v603_v2, %v603_v2  ;;  %v941_v7 = vadd.f32 1e-07, %v749_v63  ;;  %v989_v8 = vadd.f32 1e-07, %v765_v0 }
  0xe2   : > { %v511_v9 = vpop.f32.mrf.mxu0  ;;  %v607_v10 = vpop.f32.mrf.mxu1  ;;  %v781_v11 = vsub.f32 %v749_v63, %v765_v0  ;;  %v877_v25 = vmul.f32 %v749_v63, %v749_v63 }
  0xe3   : > { %v750_v12 = vadd.f32 %v718_v5, %v686_v3  ;;  %v766_v13 = vadd.f32 %v734_v6, %v702_v4  ;;  %1439 = vlog2.f32 %v941_v7  ;;  %v687_v17 = vmul.f32 %v511_v9, %v511_v9 }
  0xe4   : > { %v513_v14 = vpop.f32.mrf.mxu0  ;;  %v609_v15 = vpop.f32.mrf.mxu1  ;;  %1441 = vlog2.f32 %v989_v8  ;;  %v703_v19 = vmul.f32 %v607_v10, %v607_v10  ;;  %v813_v26 = vmul.f32 %v781_v11, %v781_v11  ;;  %v1161_v45 = vadd.f32 %v877_v25, %v876_v36 }
  0xe5   : > { %v942_v16 = vadd.f32 1e-07, %v750_v12  ;;  %v990_v18 = vadd.f32 1e-07, %v766_v13  ;;  %v719_v20 = vmul.f32 %v513_v14, %v513_v14  ;;  %v735_v21 = vmul.f32 %v609_v15, %v609_v15 }
  0xe6   : > { %v517_v22 = vpop.f32.mrf.mxu0  ;;  %v613_v23 = vpop.f32.mrf.mxu1  ;;  %v782_v27 = vsub.f32 %v750_v12, %v766_v13  ;;  %v878_v37 = vmul.f32 %v750_v12, %v750_v12  ;;  %v1119_v52 = vadd.f32 %v813_v26, %v812_v42 }
  0xe7   : > { %1443 = vlog2.f32 %v942_v16  ;;  %v751_v28 = vadd.f32 %v719_v20, %v687_v17  ;;  %v767_v29 = vadd.f32 %v735_v21, %v703_v19  ;;  %v688_v30 = vmul.f32 %v517_v22, %v517_v22 }
  0xe8   : > { %v519_v31 = vpop.f32.mrf.mxu0  ;;  %v615_v32 = vpop.f32.mrf.mxu1  ;;  %1445 = vlog2.f32 %v990_v18  ;;  %v704_v33 = vmul.f32 %v613_v23, %v613_v23  ;;  %v814_v46 = vmul.f32 %v782_v27, %v782_v27  ;;  %v1162_v54 = vadd.f32 %v1161_v45, %v878_v37 }
  0xe9   : > { %v720_v34 = vmul.f32 %v519_v31, %v519_v31  ;;  %v736_v35 = vmul.f32 %v615_v32, %v615_v32  ;;  %v943_v38 = vadd.f32 1e-07, %v751_v28  ;;  %v991_v39 = vadd.f32 1e-07, %v767_v29 }
  0xea   : > { %v523_v40 = vpop.f32.mrf.mxu0  ;;  %v619_v41 = vpop.f32.mrf.mxu1  ;;  %v783_v47 = vsub.f32 %v751_v28, %v767_v29  ;;  %v879_v51 = vmul.f32 %v751_v28, %v751_v28  ;;  %v1120_v0 = vadd.f32 %v1119_v52, %v814_v46 }
  0xeb   : > { %v752_v43 = vadd.f32 %v720_v34, %v688_v30  ;;  %v768_v44 = vadd.f32 %v736_v35, %v704_v33  ;;  %1447 = vlog2.f32 %v943_v38  ;;  %v689_v56 = vmul.f32 %v523_v40, %v523_v40 }
  0xec   : > { %v525_v48 = vpop.f32.mrf.mxu0  ;;  %v621_v49 = vpop.f32.mrf.mxu1  ;;  %1449 = vlog2.f32 %v991_v39  ;;  %v705_v60 = vmul.f32 %v619_v41, %v619_v41  ;;  %v815_v1 = vmul.f32 %v783_v47, %v783_v47  ;;  %v1163_v17 = vadd.f32 %v1162_v54, %v879_v51 }
  0xed   : > { %v1436_v50 = vpop.eup %1435  ;;  %v944_v53 = vadd.f32 1e-07, %v752_v43  ;;  %v992_v55 = vadd.f32 1e-07, %v768_v44  ;;  %v721_v61 = vmul.f32 %v525_v48, %v525_v48  ;;  %v737_v62 = vmul.f32 %v621_v49, %v621_v49 }
  0xee   : > { %v529_v57 = vpop.f32.mrf.mxu0  ;;  %v625_v58 = vpop.f32.mrf.mxu1  ;;  %v1695_v63 = vmul.f32 0.6931472, %v1436_v50  ;;  %v880_v5 = vmul.f32 %v752_v43, %v752_v43  ;;  %v784_v18 = vsub.f32 %v752_v43, %v768_v44  ;;  %v1121_v29 = vadd.f32 %v1120_v0, %v815_v1 }
  0xef   : > { %v1438_v59 = vpop.eup %1437  ;;  %1451 = vlog2.f32 %v944_v53  ;;  %v753_v6 = vadd.f32 %v721_v61, %v689_v56  ;;  %v769_v7 = vadd.f32 %v737_v62, %v705_v60  ;;  %v690_v11 = vmul.f32 %v529_v57, %v529_v57 }
  0xf0   : > { %1453 = vlog2.f32 %v992_v55  ;;  %v531_v2 = vpop.f32.mrf.mxu0  ;;  %v627_v3 = vpop.f32.mrf.mxu1  ;;  %v1697_v10 = vmul.f32 0.6931472, %v1438_v59  ;;  %v706_v12 = vmul.f32 %v625_v58, %v625_v58  ;;  %v1164_v30 = vadd.f32 %v1163_v17, %v880_v5 }
  0xf1   : > { %v1440_v4 = vpop.eup %1439  ;;  %v722_v8 = vmul.f32 %v531_v2, %v531_v2  ;;  %v738_v13 = vmul.f32 %v627_v3, %v627_v3  ;;  %v945_v19 = vadd.f32 1e-07, %v753_v6  ;;  %v993_v21 = vadd.f32 1e-07, %v769_v7 }
  0xf2   : > { %v1442_v9 = vpop.eup %1441  ;;  %v535_v14 = vpop.f32.mrf.mxu0  ;;  %v959_v16 = vmul.f32 0.6931472, %v1440_v4  ;;  %v1036_v28 = vsub.f32 %v1695_v63, %v1697_v10  ;;  %v816_v33 = vmul.f32 %v784_v18, %v784_v18  ;;  %v881_v34 = vmul.f32 %v753_v6, %v753_v6 }
  0xf3   : > { %v631_v15 = vpop.f32.mrf.mxu1  ;;  %v1007_v20 = vmul.f32 0.6931472, %v1442_v9  ;;  %v754_v22 = vadd.f32 %v722_v8, %v690_v11  ;;  %v770_v23 = vadd.f32 %v738_v13, %v706_v12  ;;  %1455 = vlog2.f32 %v945_v19 }
  0xf4   : > { %v537_v24 = vpop.f32.mrf.mxu0  ;;  %v1444_v26 = vpop.eup %1443  ;;  %1457 = vlog2.f32 %v993_v21  ;;  %v785_v39 = vsub.f32 %v753_v6, %v769_v7  ;;  %v691_v40 = vmul.f32 %v535_v14, %v535_v14  ;;  %v707_v49 = vmul.f32 %v631_v15, %v631_v15 }
  0xf5   : > { %v633_v25 = vpop.f32.mrf.mxu1  ;;  %v1446_v27 = vpop.eup %1445  ;;  %v946_v35 = vadd.f32 1e-07, %v754_v22  ;;  %v994_v36 = vadd.f32 1e-07, %v770_v23  ;;  %v1037_v37 = vsub.f32 %v959_v16, %v1007_v20  ;;  %v961_v38 = vmul.f32 0.6931472, %v1444_v26 }
  0xf6   : > { %v541_v31 = vpop.f32.mrf.mxu0  ;;  %v1009_v44 = vmul.f32 0.6931472, %v1446_v27  ;;  %v786_v45 = vsub.f32 %v754_v22, %v770_v23  ;;  %v723_v46 = vmul.f32 %v537_v24, %v537_v24  ;;  %v739_v50 = vmul.f32 %v633_v25, %v633_v25 }
  0xf7   : > { %v637_v32 = vpop.f32.mrf.mxu1  ;;  %1459 = vlog2.f32 %v946_v35  ;;  %v1122_v51 = vadd.f32 %v1121_v29, %v816_v33  ;;  %v1165_v55 = vadd.f32 %v1164_v30, %v881_v34  ;;  %v817_v58 = vmul.f32 %v785_v39, %v785_v39 }
  0xf8   : > { %v543_v41 = vpop.f32.mrf.mxu0  ;;  %v1448_v43 = vpop.eup %1447  ;;  %1461 = vlog2.f32 %v994_v36  ;;  %v755_v56 = vadd.f32 %v723_v46, %v691_v40  ;;  %v882_v59 = vmul.f32 %v754_v22, %v754_v22  ;;  %v771_v60 = vadd.f32 %v739_v50, %v707_v49 }
  0xf9   : > { %v639_v42 = vpop.f32.mrf.mxu1  ;;  %v1450_v47 = vpop.eup %1449  ;;  %v963_v48 = vmul.f32 0.6931472, %v1448_v43  ;;  %v724_v61 = vmul.f32 %v543_v41, %v543_v41  ;;  %v1053_v1 = vand.u32 2147483647, %v1037_v37  ;;  %v1038_v2 = vsub.f32 %v961_v38, %v1009_v44 }
  0xfa   : > { %v547_v52 = vpop.f32.mrf.mxu0  ;;  %v1011_v54 = vmul.f32 0.6931472, %v1450_v47  ;;  %v818_v3 = vmul.f32 %v786_v45, %v786_v45  ;;  %v692_v4 = vmul.f32 %v541_v31, %v541_v31  ;;  %v947_v7 = vadd.f32 1e-07, %v755_v56 }
  0xfb   : > { %v1701_v53 = vpop.f32.mrf.mxu1  ;;  %v708_v8 = vmul.f32 %v637_v32, %v637_v32  ;;  %v787_v12 = vsub.f32 %v755_v56, %v771_v60  ;;  %v995_v13 = vadd.f32 1e-07, %v771_v60  ;;  %v740_v14 = vmul.f32 %v639_v42, %v639_v42 }
  0xfc   : > { %v1452_v57 = vpop.eup %1451  ;;  %v549_v62 = vpop.f32.mrf.mxu0  ;;  %v1039_v5 = vsub.f32 %v963_v48, %v1011_v54  ;;  %v1052_v15 = vand.u32 2147483647, %v1036_v28  ;;  %v1123_v16 = vadd.f32 %v1122_v51, %v817_v58  ;;  %v756_v17 = vadd.f32 %v724_v61, %v692_v4 }
  0xfd   : > { %v645_v63 = vpop.f32.mrf.mxu1  ;;  %v1454_v0 = vpop.eup %1453  ;;  %v965_v6 = vmul.f32 0.6931472, %v1452_v57  ;;  %v1054_v20 = vand.u32 2147483647, %v1038_v2  ;;  %v1166_v21 = vadd.f32 %v1165_v55, %v882_v59  ;;  %v883_v22 = vmul.f32 %v755_v56, %v755_v56 }
  0xfe   : > { %v553_v9 = vpop.f32.mrf.mxu0  ;;  %v1013_v11 = vmul.f32 0.6931472, %v1454_v0  ;;  %v772_v23 = vadd.f32 %v740_v14, %v708_v8  ;;  %v1203_v25 = vadd.f32 %v1053_v1, %v1052_v15  ;;  %v1055_v26 = vand.u32 2147483647, %v1039_v5 }
  0xff   : > { %v649_v10 = vpop.f32.mrf.mxu1  ;;  %v1124_v27 = vadd.f32 %v1123_v16, %v818_v3  ;;  %1463 = vlog2.f32 %v947_v7  ;;  %v819_v34 = vmul.f32 %v787_v12, %v787_v12  ;;  %v693_v36 = vmul.f32 %v547_v52, %v547_v52 }
 0x100   : > { %v555_v18 = vpop.f32.mrf.mxu0  ;;  %v1456_v24 = vpop.eup %1455  ;;  %v1040_v32 = vsub.f32 %v965_v6, %v1013_v11  ;;  %1465 = vlog2.f32 %v995_v13  ;;  %v788_v35 = vsub.f32 %v756_v17, %v772_v23  ;;  %v725_v37 = vmul.f32 %v549_v62, %v549_v62 }
 0x101   : > { %v651_v19 = vpop.f32.mrf.mxu1  ;;  %v1458_v31 = vpop.eup %1457  ;;  %v967_v33 = vmul.f32 0.6931472, %v1456_v24  ;;  %v1204_v40 = vadd.f32 %v1203_v25, %v1054_v20  ;;  %v1167_v41 = vadd.f32 %v1166_v21, %v883_v22  ;;  %v948_v42 = vadd.f32 1e-07, %v756_v17 }
 0x102   : > { %v559_v29 = vpop.f32.mrf.mxu0  ;;  %v1015_v28 = vmul.f32 0.6931472, %v1458_v31  ;;  %v741_v43 = vmul.f32 %v645_v63, %v645_v63  ;;  %v884_v46 = vmul.f32 %v756_v17, %v756_v17  ;;  %v757_v47 = vadd.f32 %v725_v37, %v693_v36 }
 0x103   : > { %v655_v30 = vpop.f32.mrf.mxu1  ;;  %v726_v48 = vmul.f32 %v555_v18, %v555_v18  ;;  %v1205_v51 = vadd.f32 %v1204_v40, %v1055_v26  ;;  %v1056_v55 = vand.u32 2147483647, %v1040_v32  ;;  %v709_v52 = vmul.f32 %v1701_v53, %v1701_v53 }
 0x104   : > { %v561_v38 = vpop.f32.mrf.mxu0  ;;  %v1460_v44 = vpop.eup %1459  ;;  %v1041_v45 = vsub.f32 %v967_v33, %v1015_v28  ;;  %v742_v56 = vmul.f32 %v651_v19, %v651_v19  ;;  %v1125_v57 = vadd.f32 %v1124_v27, %v819_v34  ;;  %v820_v58 = vmul.f32 %v788_v35, %v788_v35 }
 0x105   : > { %v657_v39 = vpop.f32.mrf.mxu1  ;;  %v1462_v54 = vpop.eup %1461  ;;  %v996_v59 = vadd.f32 1e-07, %v772_v23  ;;  %v694_v60 = vmul.f32 %v553_v9, %v553_v9  ;;  %v1705_v63 = vmul.f32 0.6931472, %v1460_v44  ;;  %1467 = vlog2.f32 %v948_v42 }
 0x106   : > { %v565_v49 = vpop.f32.mrf.mxu0  ;;  %v773_v0 = vadd.f32 %v741_v43, %v709_v52  ;;  %v710_v1 = vmul.f32 %v649_v10, %v649_v10  ;;  %v1057_v2 = vand.u32 2147483647, %v1041_v45  ;;  %v1707_v3 = vmul.f32 0.6931472, %v1462_v54 }
 0x107   : > { %v661_v50 = vpop.f32.mrf.mxu1  ;;  %v949_v4 = vadd.f32 1e-07, %v757_v47  ;;  %v758_v5 = vadd.f32 %v726_v48, %v694_v60  ;;  %v1206_v8 = vadd.f32 %v1205_v51, %v1056_v55  ;;  %v1168_v11 = vadd.f32 %v1167_v41, %v884_v46 }
 0x108   : > { %v567_v61 = vpop.f32.mrf.mxu0  ;;  %v774_v53 = vadd.f32 %v742_v56, %v710_v1  ;;  %1469 = vlog2.f32 %v996_v59  ;;  %v1126_v12 = vadd.f32 %v1125_v57, %v820_v58  ;;  %v885_v14 = vmul.f32 %v757_v47, %v757_v47 }
 0x109   : > { %v663_v62 = vpop.f32.mrf.mxu1  ;;  %v789_v15 = vsub.f32 %v757_v47, %v773_v0  ;;  %v997_v16 = vadd.f32 1e-07, %v773_v0  ;;  %v695_v17 = vmul.f32 %v559_v29, %v559_v29  ;;  %v1709_v18 = vadd.f32 %v1206_v8, %v1057_v2 }
 0x10a   : > { %v571_v6 = vpop.f32.mrf.mxu0  ;;  %v1042_v10 = vsub.f32 %v1705_v63, %v1707_v3  ;;  %1471 = vlog2.f32 %v949_v4  ;;  %v950_v19 = vadd.f32 1e-07, %v758_v5  ;;  %v998_v21 = vadd.f32 1e-07, %v774_v53 }
 0x10b   : > { %v667_v7 = vpop.f32.mrf.mxu1  ;;  %v711_v22 = vmul.f32 %v655_v30, %v655_v30  ;;  %v727_v23 = vmul.f32 %v561_v38, %v561_v38  ;;  %v743_v24 = vmul.f32 %v657_v39, %v657_v39  ;;  %v696_v26 = vmul.f32 %v565_v49, %v565_v49 }
 0x10c   : > { %v573_v9 = vpop.f32.mrf.mxu0  ;;  %v1464_v20 = vpop.eup %1463  ;;  %v712_v27 = vmul.f32 %v661_v50, %v661_v50  ;;  %v728_v31 = vmul.f32 %v567_v61, %v567_v61  ;;  %v744_v32 = vmul.f32 %v663_v62, %v663_v62  ;;  %v821_v29 = vmul.f32 %v789_v15, %v789_v15 }
 0x10d   : > { %v669_v13 = vpop.f32.mrf.mxu1  ;;  %v1466_v25 = vpop.eup %1465  ;;  %v790_v28 = vsub.f32 %v758_v5, %v774_v53  ;;  %v759_v35 = vadd.f32 %v727_v23, %v695_v17  ;;  %v775_v36 = vadd.f32 %v743_v24, %v711_v22  ;;  %v1169_v37 = vadd.f32 %v1168_v11, %v885_v14 }
 0x10e   : > { %v577_v33 = vpop.f32.mrf.mxu0  ;;  %1473 = vlog2.f32 %v997_v16  ;;  %v760_v40 = vadd.f32 %v728_v31, %v696_v26  ;;  %v776_v41 = vadd.f32 %v744_v32, %v712_v27  ;;  %v971_v42 = vmul.f32 0.6931472, %v1464_v20 }
 0x10f   : > { %v673_v34 = vpop.f32.mrf.mxu1  ;;  %v1019_v43 = vmul.f32 0.6931472, %v1466_v25  ;;  %1475 = vlog2.f32 %v950_v19  ;;  %v951_v30 = vadd.f32 1e-07, %v759_v35  ;;  %v886_v38 = vmul.f32 %v758_v5, %v758_v5 }
 0x110   : > { %1477 = vlog2.f32 %v998_v21  ;;  %v999_v39 = vadd.f32 1e-07, %v775_v36  ;;  %v952_v44 = vadd.f32 1e-07, %v760_v40  ;;  %v579_v45 = vpop.f32.mrf.mxu0  ;;  %v1127_v47 = vadd.f32 %v1126_v12, %v821_v29 }
 0x111   : > { %v675_v46 = vpop.f32.mrf.mxu1  ;;  %v822_v48 = vmul.f32 %v790_v28, %v790_v28  ;;  %1479 = vlog2.f32 %v951_v30  ;;  %v697_v49 = vmul.f32 %v571_v6, %v571_v6  ;;  %v791_v54 = vsub.f32 %v759_v35, %v775_v36 }
 0x112   : > { %v1468_v50 = vpop.eup %1467  ;;  %1481 = vlog2.f32 %v999_v39  ;;  %v1000_v51 = vadd.f32 1e-07, %v776_v41  ;;  %v729_v55 = vmul.f32 %v573_v9, %v573_v9  ;;  %v1043_v52 = vsub.f32 %v971_v42, %v1019_v43  ;;  %v583_v61 = vpop.f32.mrf.mxu0 }
 0x113   : > { %1483 = vlog2.f32 %v952_v44  ;;  %v713_v56 = vmul.f32 %v667_v7, %v667_v7  ;;  %v745_v57 = vmul.f32 %v669_v13, %v669_v13  ;;  %v1713_v58 = vand.u32 2147483647, %v1042_v10  ;;  %v679_v62 = vpop.f32.mrf.mxu1 }
 0x114   : > { %v1170_v59 = vadd.f32 %v1169_v37, %v886_v38  ;;  %1485 = vlog2.f32 %v1000_v51  ;;  %v761_v60 = vadd.f32 %v729_v55, %v697_v49  ;;  %v1715_v0 = vmul.f32 0.6931472, %v1468_v50  ;;  %v585_v16 = vpop.f32.mrf.mxu0 }
 0x115   : > { %v1470_v63 = vpop.eup %1469  ;;  %v1128_v1 = vadd.f32 %v1127_v47, %v822_v48  ;;  %v792_v2 = vsub.f32 %v760_v40, %v776_v41  ;;  %v777_v3 = vadd.f32 %v745_v57, %v713_v56  ;;  %v823_v4 = vmul.f32 %v791_v54, %v791_v54  ;;  %v681_v17 = vpop.f32.mrf.mxu1 }
 0x116   : > { %v953_v5 = vadd.f32 1e-07, %v761_v60  ;;  %v698_v6 = vmul.f32 %v577_v33, %v577_v33  ;;  %v730_v53 = vmul.f32 %v579_v45, %v579_v45  ;;  %v1717_v7 = vand.u32 2147483647, %v1043_v52 }
 0x117   : > { %v1472_v8 = vpop.eup %1471  ;;  %v887_v11 = vmul.f32 %v759_v35, %v759_v35  ;;  %v793_v12 = vsub.f32 %v761_v60, %v777_v3  ;;  %v1001_v9 = vadd.f32 1e-07, %v777_v3  ;;  %v714_v13 = vmul.f32 %v673_v34, %v673_v34 }
 0x118   : > { %1487 = vlog2.f32 %v953_v5  ;;  %v762_v14 = vadd.f32 %v730_v53, %v698_v6  ;;  %v746_v15 = vmul.f32 %v675_v46, %v675_v46  ;;  %v1021_v10 = vmul.f32 0.6931472, %v1470_v63 }
 0x119   : > { %v888_v19 = vmul.f32 %v760_v40, %v760_v40  ;;  %v824_v20 = vmul.f32 %v792_v2, %v792_v2  ;;  %1489 = vlog2.f32 %v1001_v9  ;;  %v1129_v21 = vadd.f32 %v1128_v1, %v823_v4 }
 0x11a   : > { %v825_v22 = vmul.f32 %v793_v12, %v793_v12  ;;  %v954_v23 = vadd.f32 1e-07, %v762_v14  ;;  %v778_v24 = vadd.f32 %v746_v15, %v714_v13  ;;  %v699_v26 = vmul.f32 %v583_v61, %v583_v61 }
 0x11b   : > { %v1474_v25 = vpop.eup %1473  ;;  %v715_v27 = vmul.f32 %v679_v62, %v679_v62  ;;  %v731_v31 = vmul.f32 %v585_v16, %v585_v16  ;;  %v747_v32 = vmul.f32 %v681_v17, %v681_v17  ;;  %v1171_v29 = vadd.f32 %v1170_v59, %v887_v11 }
 0x11c   : > { %v1476_v33 = vpop.eup %1475  ;;  %1491 = vlog2.f32 %v954_v23  ;;  %v1002_v34 = vadd.f32 1e-07, %v778_v24  ;;  %v794_v28 = vsub.f32 %v762_v14, %v778_v24  ;;  %v975_v36 = vmul.f32 0.6931472, %v1472_v8 }
 0x11d   : > { %v1478_v35 = vpop.eup %1477  ;;  %v763_v37 = vadd.f32 %v731_v31, %v699_v26  ;;  %v779_v40 = vadd.f32 %v747_v32, %v715_v27  ;;  %v1130_v41 = vadd.f32 %v1129_v21, %v824_v20  ;;  %v1023_v43 = vmul.f32 0.6931472, %v1474_v25 }
 0x11e   : > { %v1480_v42 = vpop.eup %1479  ;;  %v889_v30 = vmul.f32 %v761_v60, %v761_v60  ;;  %1493 = vlog2.f32 %v1002_v34  ;;  %v826_v38 = vmul.f32 %v794_v28, %v794_v28  ;;  %v1044_v49 = vsub.f32 %v1715_v0, %v1021_v10 }
 0x11f   : > { %v1482_v39 = vpop.eup %1481  ;;  %v955_v44 = vadd.f32 1e-07, %v763_v37  ;;  %v1003_v45 = vadd.f32 1e-07, %v779_v40  ;;  %v795_v46 = vsub.f32 %v763_v37, %v779_v40  ;;  %v1131_v47 = vadd.f32 %v1130_v41, %v825_v22 }
 0x120   : > { %v1484_v48 = vpop.eup %1483  ;;  %v977_v50 = vmul.f32 0.6931472, %v1476_v33  ;;  %v1025_v54 = vmul.f32 0.6931472, %v1478_v35  ;;  %v890_v51 = vmul.f32 %v762_v14, %v762_v14  ;;  %v1172_v57 = vadd.f32 %v1171_v29, %v888_v19 }
 0x121   : > { %v1486_v55 = vpop.eup %1485  ;;  %1495 = vlog2.f32 %v955_v44  ;;  %v827_v52 = vmul.f32 %v795_v46, %v795_v46  ;;  %v1132_v56 = vadd.f32 %v1131_v47, %v826_v38  ;;  %v1045_v59 = vsub.f32 %v975_v36, %v1023_v43 }
 0x122   : > { %v979_v60 = vmul.f32 0.6931472, %v1480_v42  ;;  %v1027_v61 = vmul.f32 0.6931472, %v1482_v39  ;;  %1497 = vlog2.f32 %v1003_v45  ;;  %v1208_v62 = vadd.f32 %v1709_v18, %v1713_v58 }
 0x123   : > { %v1133_v63 = vadd.f32 %v1132_v56, %v827_v52  ;;  %v891_v1 = vmul.f32 %v763_v37, %v763_v37  ;;  %v1173_v2 = vadd.f32 %v1172_v57, %v889_v30  ;;  %v1060_v3 = vand.u32 2147483647, %v1044_v49 }
 0x124   : > { %v1046_v0 = vsub.f32 %v977_v50, %v1025_v54  ;;  %v1029_v4 = vmul.f32 0.6931472, %v1486_v55  ;;  %v981_v5 = vmul.f32 0.6931472, %v1484_v48  ;;  %v1209_v11 = vadd.f32 %v1208_v62, %v1717_v7 }
 0x125   : > { %v1488_v6 = vpop.eup %1487  ;;  %1134 = vadd.xlane.f32.xlu0 %v1133_v63  ;;  %v1174_v53 = vadd.f32 %v1173_v2, %v890_v51  ;;  %v1061_v12 = vand.u32 2147483647, %v1045_v59  ;;  %v1047_v13 = vsub.f32 %v979_v60, %v1027_v61 }
 0x126   : > { %v1490_v8 = vpop.eup %1489  ;;  %v983_v9 = vmul.f32 0.6931472, %v1488_v6  ;;  %v1210_v16 = vadd.f32 %v1209_v11, %v1060_v3  ;;  %v1062_v18 = vand.u32 2147483647, %v1046_v0  ;;  %v1048_v58 = vsub.f32 %v981_v5, %v1029_v4 }
 0x127   : > { %v1175_v14 = vadd.f32 %v1174_v53, %v891_v1  ;;  %v1031_v15 = vmul.f32 0.6931472, %v1490_v8  ;;  %v1063_v20 = vand.u32 2147483647, %v1047_v13 }
 0x128   : > { %v1211_v21 = vadd.f32 %v1210_v16, %v1061_v12  ;;  %v1064_v24 = vand.u32 2147483647, %v1048_v58 }
 0x129   : > { %v1492_v17 = vpop.eup %1491  ;;  %1176 = vadd.xlane.f32.xlu0 %v1175_v14  ;;  %v1049_v19 = vsub.f32 %v983_v9, %v1031_v15 }
 0x12a   : > { %v985_v10 = vmul.f32 0.6931472, %v1492_v17  ;;  %v1212_v25 = vadd.f32 %v1211_v21, %v1062_v18 }
 0x12b   : > { %v1494_v22 = vpop.eup %1493  ;;  %v1065_v27 = vand.u32 2147483647, %v1049_v19 }
 0x12c   : > { %v1033_v23 = vmul.f32 0.6931472, %v1494_v22  ;;  %v1213_v31 = vadd.f32 %v1212_v25, %v1063_v20 }
 0x12e   : > { %v1496_v26 = vpop.eup %1495  ;;  %v1050_v7 = vsub.f32 %v985_v10, %v1033_v23  ;;  %v1214_v28 = vadd.f32 %v1213_v31, %v1064_v24 }
 0x12f   : > { %v1498_v32 = vpop.eup %1497  ;;  %v987_v33 = vmul.f32 0.6931472, %v1496_v26 }
 0x130   : > { %v1035_v29 = vmul.f32 0.6931472, %v1498_v32  ;;  %v1066_v34 = vand.u32 2147483647, %v1050_v7  ;;  %v1215_v36 = vadd.f32 %v1214_v28, %v1065_v27 }
 0x132   : > { %v1051_v35 = vsub.f32 %v987_v33, %v1035_v29  ;;  %v1216_v40 = vadd.f32 %v1215_v36, %v1066_v34 }
 0x134   : > { %v1067_v37 = vand.u32 2147483647, %v1051_v35 }
 0x136   : > { %v1217_v41 = vadd.f32 %v1216_v40, %v1067_v37 }
 0x138   : > { %1218 = vadd.xlane.f32.xlu1 %v1217_v41 }
 0x1ae   : > { %v1135_v42 = vpop.xlane.xlu0 %1134 }
 0x1af   : > { %v1136_v43 = vrot.slane %v1135_v42, 4 }
 0x1b1   : > { %v1137_v30 = vadd.f32 %v1136_v43, %v1135_v42 }
 0x1b2   : > { %v1177_v38 = vpop.xlane.xlu0 %1176 }
 0x1b3   : > { %v1138_v39 = vrot.slane %v1137_v30, 2  ;;  %v1178_v44 = vrot.slane %v1177_v38, 4 }
 0x1b5   : > { %v1179_v45 = vadd.f32 %v1178_v44, %v1177_v38  ;;  %v1139_v46 = vadd.f32 %v1138_v39, %v1137_v30 }
 0x1b7   : > { %v1180_v47 = vrot.slane %v1179_v45, 2  ;;  %v1140_v48 = vrot.slane %v1139_v46, 1 }
 0x1b9   : > { %v1181_v49 = vadd.f32 %v1180_v47, %v1179_v45  ;;  %v1141_v50 = vadd.f32 %v1140_v48, %v1139_v46 }
 0x1bb   : > { %1404 = vpush %v1141_v50  ;;  %v1182_v54 = vrot.slane %v1181_v49, 1 }
 0x1bd   : > { %v1183_v51 = vadd.f32 %v1182_v54, %v1181_v49 }
 0x1bf   : > { %1406 = vpush %v1183_v51 }
 0x1c1   : > { %v1219_v55 = vpop.xlane.xlu1 %1218 }
 0x1c2   : > { %v1220_v52 = vrot.slane %v1219_v55, 4 }
 0x1c4   : > { %v1221_v56 = vadd.f32 %v1220_v52, %v1219_v55 }
 0x1c6   : > { %v1222_v57 = vrot.slane %v1221_v56, 2 }
 0x1c8   : > { %v1223_v59 = vadd.f32 %v1222_v57, %v1221_v56 }
 0x1ca   : > { %v1224_v60 = vrot.slane %v1223_v59, 1 }
 0x1cc   : > { %v1225_v61 = vadd.f32 %v1224_v60, %v1223_v59 }
 0x1ce   : > { %1408 = vpush %v1225_v61 }
 0x1ec   : > { %s1405_s22 = spop %1404 }
 0x1ed   : > { %v1143_v62 = vstv %s1405_s22 }
 0x1ee   : > { %1144 = vst [vmem:[%s229_s21] sm:$0xff] %v1143_v62 }
 0x1f0   : > { %s1407_s26 = spop %1406 }
 0x1f1   : > { %v1185_v63 = vstv %s1407_s26 }
 0x1f2   : > { %1186 = vst [vmem:[%s233_s25] sm:$0xff] %v1185_v63 }
 0x1ff   : > { %s1409_s30 = spop %1408 }
 0x200   : > { %v1227_v1 = vstv %s1409_s30 }
 0x201   : > { %1228 = vst [vmem:[%s237_s29] sm:$0xff] %v1227_v1 }
 0x202 PF: > { %s15_s17 = sadd.s32 1, %s1521_s17   ;;  %s1748_s15 = smov %s1517_s16 }
 0x203   : > { %p12_p6 = scmp.ge.s32.totalorder %s15_s17, 4   ;;  %s1749_s16 = smov %s1751_s18 }
 0x205   :  { %14 = sbr.rel (!%p12_p6) target bundleno = 2 (0x2), region = 90 }

// kernel: mss_loss.2
= control target key start
LH: loop header
LB: loop body
LE: loop exit
PB: predicated region body
PF: predicated region fallthrough
CT: control target
= control target key end

     0   :  { %s1565_s15 = smov 0   ;;  %s1567_s16 = smov 0   ;;  %s1783_s0 = inlined_call_operand.vmem [shape: f32[64,256], index: 0, kind: input, shape index: {}]   ;;  %s1784_s1 = inlined_call_operand.vmem [shape: f32[512,64], index: 1, kind: input, shape index: {}]   ;;  %s1785_s2 = inlined_call_operand.vmem [shape: f32[2,8,128], index: 2, kind: output, shape index: {0}]   ;;  %s1786_s3 = inlined_call_operand.vmem [shape: f32[2,8,128], index: 3, kind: output, shape index: {1}]   ;;  %s1787_s4 = inlined_call_operand.vmem [shape: f32[2,8,128], index: 4, kind: output, shape index: {2}]  }
   0x1   :  { %s1569_s17 = smov 0  }
   0x2 LB: > { %s27_s18 = sadd.s32 1, %s1533_s16  ;;  %p1364_p0 = scmp.ge.s32.totalorder %s1537_s17, 1  ;;  %s1537_s17 = sphi %s1569_s17, %s15_s17   ;;  %s1533_s16 = sphi %s1567_s16, %s1789_s16   ;;  %s1529_s15 = sphi %s1565_s15, %s1788_s15  }
   0x3   : > { %p29_p1 = scmp.ge.s32.totalorder %s27_s18, 2  ;;  %p184_p2 = scmp.lt.s32.totalorder %s1537_s17, 3 }
   0x5   : > { %s1791_s18 = smov (%p29_p1, %s27_s18), 0  ;;  %p185_p3 = pnand %p1364_p0, %p184_p2 }
   0x6   : > { %s1365_s25 = sshll.u32 (!%p185_p3), %s1529_s15, 5  ;;  %p226_p5 = scmp.lt.s32.totalorder (!%p185_p3), %s1529_s15, 1 }
   0x7   : > { %188 = sbr.rel (%p185_p3) target bundleno = 522 (0x20a), region = 28  ;;  %p220_p4 = scmp.lt.s32.totalorder (!%p185_p3), %s1365_s25, 63 }
   0xc   : > { %v337_v0 = vld [vmem:[%s1783_s0 + $0x78] sm:$0xff]  ;;  %v336_v1 = vld [vmem:[%s1783_s0 + $0x70] sm:$0xff]  ;;  %v335_v2 = vld [vmem:[%s1783_s0 + $0x68] sm:$0xff]  ;;  %s1793_s25 = smov (!%p220_p4, %s1365_s25), 63  ;;  %vm338_vm0 = vcmask 523264   ;;  %v1539_v18 = vmov 0.0  }
   0xd   : > { %451 = vmatprep.subr.mxu0 %v337_v0  ;;  %1404 = vmatprep.subr.mxu1 %v337_v0  ;;  %v334_v3 = vld [vmem:[%s1783_s0 + $0x60] sm:$0xff]  ;;  %v333_v4 = vld [vmem:[%s1783_s0 + $0x58] sm:$0xff]  ;;  %v332_v5 = vld [vmem:[%s1783_s0 + $0x50] sm:$0xff]  ;;  %s1366_s22 = sshll.u32 %s1793_s25, 3  ;;  %s1795_s15 = smov (!%p226_p5, %s1529_s15), 1 }
   0xe   : > { %452 = vmatpush1.msra.mxu0 %v336_v1  ;;  %1412 = vmatpush1.msra.mxu1 %v336_v1  ;;  %v331_v6 = vld [vmem:[%s1783_s0 + $0x48] sm:$0xff]  ;;  %v330_v7 = vld [vmem:[%s1783_s0 + $0x40] sm:$0xff]  ;;  %v329_v8 = vld [vmem:[%s1783_s0 + $0x38] sm:$0xff]  ;;  %s1634_s5 = scalar_lea.vmem %s1784_s1, %s1366_s22  ;;  %s1367_s8 = sshll.u32 %s1795_s15, 3 }
   0xf   : > { %453 = vmatprep.subr.mxu0 %v335_v2  ;;  %1405 = vmatprep.subr.mxu1 %v335_v2  ;;  %v328_v9 = vld [vmem:[%s1783_s0 + $0x30] sm:$0xff]  ;;  %v327_v10 = vld [vmem:[%s1783_s0 + $0x28] sm:$0xff]  ;;  %v326_v11 = vld [vmem:[%s1783_s0 + $0x20] sm:$0xff]  ;;  %s229_s11 = scalar_lea.vmem %s1785_s2, %s1367_s8  ;;  %s233_s19 = scalar_lea.vmem %s1786_s3, %s1367_s8 }
  0x10   : > { %454 = vmatpush1.msra.mxu0 %v334_v3  ;;  %1413 = vmatpush1.msra.mxu1 %v334_v3  ;;  %v325_v12 = vld [vmem:[%s1783_s0 + $0x18] sm:$0xff]  ;;  %v324_v13 = vld [vmem:[%s1783_s0 + $0x10] sm:$0xff]  ;;  %v323_v14 = vld [vmem:[%s1783_s0 + $0x8] sm:$0xff]  ;;  %s237_s23 = scalar_lea.vmem %s1787_s4, %s1367_s8 }
  0x11   : > { %455 = vmatprep.subr.mxu0 %v333_v4  ;;  %1406 = vmatprep.subr.mxu1 %v333_v4  ;;  %v322_v15 = vld [vmem:[%s1783_s0] sm:$0xff]  ;;  %v291_v19 = vld [vmem:[%s1634_s5 + $0x8] sm:$0xff]  ;;  %v292_v21 = vld [vmem:[%s1634_s5 + $0x10] sm:$0xff] }
  0x12   : > { %456 = vmatpush1.msra.mxu0 %v332_v5  ;;  %1414 = vmatpush1.msra.mxu1 %v332_v5  ;;  %v290_v16 = vld [vmem:[%s1634_s5] sm:$0xff]  ;;  %v307_v20 = vld [vmem:[%s1634_s5 + $0x88] sm:$0xff]  ;;  %v308_v22 = vld [vmem:[%s1634_s5 + $0x90] sm:$0xff] }
  0x13   : > { %457 = vmatprep.subr.mxu0 %v331_v6  ;;  %1407 = vmatprep.subr.mxu1 %v331_v6  ;;  %v306_v17 = vld [vmem:[%s1634_s5 + $0x80] sm:$0xff]  ;;  %v293_v23 = vld [vmem:[%s1634_s5 + $0x18] sm:$0xff]  ;;  %v295_v27 = vld [vmem:[%s1634_s5 + $0x28] sm:$0xff] }
  0x14   : > { %458 = vmatpush1.msra.mxu0 %v330_v7  ;;  %1415 = vmatpush1.msra.mxu1 %v330_v7  ;;  %v309_v24 = vld [vmem:[%s1634_s5 + $0x98] sm:$0xff]  ;;  %v294_v25 = vld [vmem:[%s1634_s5 + $0x20] sm:$0xff]  ;;  %v311_v28 = vld [vmem:[%s1634_s5 + $0xa8] sm:$0xff] }
  0x15   : > { %459 = vmatprep.subr.mxu0 %v329_v8  ;;  %1408 = vmatprep.subr.mxu1 %v329_v8  ;;  %v310_v26 = vld [vmem:[%s1634_s5 + $0xa0] sm:$0xff]  ;;  %v296_v29 = vld [vmem:[%s1634_s5 + $0x30] sm:$0xff]  ;;  %v297_v31 = vld [vmem:[%s1634_s5 + $0x38] sm:$0xff] }
  0x16   : > { %460 = vmatpush1.msra.mxu0 %v328_v9  ;;  %1416 = vmatpush1.msra.mxu1 %v328_v9  ;;  %v312_v30 = vld [vmem:[%s1634_s5 + $0xb0] sm:$0xff]  ;;  %v313_v32 = vld [vmem:[%s1634_s5 + $0xb8] sm:$0xff]  ;;  %v298_v33 = vld [vmem:[%s1634_s5 + $0x40] sm:$0xff] }
  0x17   : > { %461 = vmatprep.subr.mxu0 %v327_v10  ;;  %1409 = vmatprep.subr.mxu1 %v327_v10  ;;  %v314_v34 = vld [vmem:[%s1634_s5 + $0xc0] sm:$0xff]  ;;  %v299_v35 = vld [vmem:[%s1634_s5 + $0x48] sm:$0xff]  ;;  %v300_v37 = vld [vmem:[%s1634_s5 + $0x50] sm:$0xff] }
  0x18   : > { %462 = vmatpush1.msra.mxu0 %v326_v11  ;;  %1417 = vmatpush1.msra.mxu1 %v326_v11  ;;  %v315_v36 = vld [vmem:[%s1634_s5 + $0xc8] sm:$0xff]  ;;  %v316_v38 = vld [vmem:[%s1634_s5 + $0xd0] sm:$0xff]  ;;  %v301_v39 = vld [vmem:[%s1634_s5 + $0x58] sm:$0xff] }
  0x19   : > { %463 = vmatprep.subr.mxu0 %v325_v12  ;;  %1410 = vmatprep.subr.mxu1 %v325_v12  ;;  %v317_v40 = vld [vmem:[%s1634_s5 + $0xd8] sm:$0xff]  ;;  %v302_v41 = vld [vmem:[%s1634_s5 + $0x60] sm:$0xff]  ;;  %v303_v43 = vld [vmem:[%s1634_s5 + $0x68] sm:$0xff] }
  0x1a   : > { %464 = vmatpush1.msra.mxu0 %v324_v13  ;;  %1418 = vmatpush1.msra.mxu1 %v324_v13  ;;  %v318_v42 = vld [vmem:[%s1634_s5 + $0xe0] sm:$0xff]  ;;  %v319_v44 = vld [vmem:[%s1634_s5 + $0xe8] sm:$0xff]  ;;  %v304_v45 = vld [vmem:[%s1634_s5 + $0x70] sm:$0xff] }
  0x1b   : > { %465 = vmatprep.subr.mxu0 %v323_v14  ;;  %1411 = vmatprep.subr.mxu1 %v323_v14  ;;  %v320_v46 = vld [vmem:[%s1634_s5 + $0xf0] sm:$0xff]  ;;  %v305_v47 = vld [vmem:[%s1634_s5 + $0x78] sm:$0xff] }
  0x1c   : > { %466 = vmatpush1.msra.mxu0 %v322_v15  ;;  %1419 = vmatpush1.msra.mxu1 %v322_v15  ;;  %v321_v48 = vld [vmem:[%s1634_s5 + $0xf8] sm:$0xff] }
  0x1d   : > { %499 = vmatprep.mubr.f32.mxu0 %v1539_v18  ;;  %595 = vmatprep.mubr.f32.mxu1 %v1539_v18 }
  0x1e   : > { %1370 = vmatmul.mubr.msk.f32.vlgmr.msra.gmra.mxu0 %vm338_vm0, %v290_v16  ;;  %1386 = vmatmul.mubr.msk.f32.vlgmr.msra.gmra.mxu1 %vm338_vm0, %v306_v17 }
  0x1f   : > { %505 = vmatprep.mubr.f32.mxu0 %v1539_v18  ;;  %601 = vmatprep.mubr.f32.mxu1 %v1539_v18 }
  0x22   : > { %1371 = vmatmul.mubr.msk.f32.gmra.mxu0 %vm338_vm0, %v291_v19  ;;  %1387 = vmatmul.mubr.msk.f32.gmra.mxu1 %vm338_vm0, %v307_v20 }
  0x23   : > { %511 = vmatprep.mubr.f32.mxu0 %v1539_v18  ;;  %607 = vmatprep.mubr.f32.mxu1 %v1539_v18 }
  0x26   : > { %1372 = vmatmul.mubr.msk.f32.gmra.mxu0 %vm338_vm0, %v292_v21  ;;  %1388 = vmatmul.mubr.msk.f32.gmra.mxu1 %vm338_vm0, %v308_v22 }
  0x27   : > { %517 = vmatprep.mubr.f32.mxu0 %v1539_v18  ;;  %613 = vmatprep.mubr.f32.mxu1 %v1539_v18 }
  0x2a   : > { %1373 = vmatmul.mubr.msk.f32.gmra.mxu0 %vm338_vm0, %v293_v23  ;;  %1389 = vmatmul.mubr.msk.f32.gmra.mxu1 %vm338_vm0, %v309_v24 }
  0x2b   : > { %523 = vmatprep.mubr.f32.mxu0 %v1539_v18  ;;  %619 = vmatprep.mubr.f32.mxu1 %v1539_v18 }
  0x2e   : > { %1374 = vmatmul.mubr.msk.f32.gmra.mxu0 %vm338_vm0, %v294_v25  ;;  %1390 = vmatmul.mubr.msk.f32.gmra.mxu1 %vm338_vm0, %v310_v26 }
  0x2f   : > { %529 = vmatprep.mubr.f32.mxu0 %v1539_v18  ;;  %625 = vmatprep.mubr.f32.mxu1 %v1539_v18 }
  0x32   : > { %1375 = vmatmul.mubr.msk.f32.gmra.mxu0 %vm338_vm0, %v295_v27  ;;  %1391 = vmatmul.mubr.msk.f32.gmra.mxu1 %vm338_vm0, %v311_v28 }
  0x33   : > { %535 = vmatprep.mubr.f32.mxu0 %v1539_v18  ;;  %631 = vmatprep.mubr.f32.mxu1 %v1539_v18 }
  0x36   : > { %1376 = vmatmul.mubr.msk.f32.gmra.mxu0 %vm338_vm0, %v296_v29  ;;  %1392 = vmatmul.mubr.msk.f32.gmra.mxu1 %vm338_vm0, %v312_v30 }
  0x37   : > { %541 = vmatprep.mubr.f32.mxu0 %v1539_v18  ;;  %637 = vmatprep.mubr.f32.mxu1 %v1539_v18 }
  0x3a   : > { %1377 = vmatmul.mubr.msk.f32.gmra.mxu0 %vm338_vm0, %v297_v31  ;;  %1393 = vmatmul.mubr.msk.f32.gmra.mxu1 %vm338_vm0, %v313_v32 }
  0x3b   : > { %547 = vmatprep.mubr.f32.mxu0 %v1539_v18  ;;  %643 = vmatprep.mubr.f32.mxu1 %v1539_v18 }
  0x3e   : > { %1378 = vmatmul.mubr.msk.f32.gmra.mxu0 %vm338_vm0, %v298_v33  ;;  %1394 = vmatmul.mubr.msk.f32.gmra.mxu1 %vm338_vm0, %v314_v34 }
  0x3f   : > { %553 = vmatprep.mubr.f32.mxu0 %v1539_v18  ;;  %649 = vmatprep.mubr.f32.mxu1 %v1539_v18 }
  0x42   : > { %1379 = vmatmul.mubr.msk.f32.gmra.mxu0 %vm338_vm0, %v299_v35  ;;  %1395 = vmatmul.mubr.msk.f32.gmra.mxu1 %vm338_vm0, %v315_v36 }
  0x43   : > { %559 = vmatprep.mubr.f32.mxu0 %v1539_v18  ;;  %655 = vmatprep.mubr.f32.mxu1 %v1539_v18 }
  0x46   : > { %1380 = vmatmul.mubr.msk.f32.gmra.mxu0 %vm338_vm0, %v300_v37  ;;  %1396 = vmatmul.mubr.msk.f32.gmra.mxu1 %vm338_vm0, %v316_v38 }
  0x47   : > { %565 = vmatprep.mubr.f32.mxu0 %v1539_v18  ;;  %661 = vmatprep.mubr.f32.mxu1 %v1539_v18 }
  0x4a   : > { %1381 = vmatmul.mubr.msk.f32.gmra.mxu0 %vm338_vm0, %v301_v39  ;;  %1397 = vmatmul.mubr.msk.f32.gmra.mxu1 %vm338_vm0, %v317_v40 }
  0x4b   : > { %571 = vmatprep.mubr.f32.mxu0 %v1539_v18  ;;  %667 = vmatprep.mubr.f32.mxu1 %v1539_v18 }
  0x4e   : > { %1382 = vmatmul.mubr.msk.f32.gmra.mxu0 %vm338_vm0, %v302_v41  ;;  %1398 = vmatmul.mubr.msk.f32.gmra.mxu1 %vm338_vm0, %v318_v42 }
  0x4f   : > { %577 = vmatprep.mubr.f32.mxu0 %v1539_v18  ;;  %673 = vmatprep.mubr.f32.mxu1 %v1539_v18 }
  0x52   : > { %1383 = vmatmul.mubr.msk.f32.gmra.mxu0 %vm338_vm0, %v303_v43  ;;  %1399 = vmatmul.mubr.msk.f32.gmra.mxu1 %vm338_vm0, %v319_v44 }
  0x53   : > { %583 = vmatprep.mubr.f32.mxu0 %v1539_v18  ;;  %679 = vmatprep.mubr.f32.mxu1 %v1539_v18 }
  0x56   : > { %1384 = vmatmul.mubr.msk.f32.gmra.mxu0 %vm338_vm0, %v304_v45  ;;  %1400 = vmatmul.mubr.msk.f32.gmra.mxu1 %vm338_vm0, %v320_v46 }
  0x57   : > { %589 = vmatprep.mubr.f32.mxu0 %v1539_v18  ;;  %685 = vmatprep.mubr.f32.mxu1 %v1539_v18 }
  0x5a   : > { %1385 = vmatmul.mubr.msk.f32.gmra.mxu0 %vm338_vm0, %v305_v47  ;;  %1401 = vmatmul.mubr.msk.f32.gmra.mxu1 %vm338_vm0, %v321_v48 }
  0xde   : > { %v501_v49 = vpop.f32.mrf.mxu0  ;;  %v597_v50 = vpop.f32.mrf.mxu1 }
  0xdf   : > { %v692_v53 = vmul.f32 %v501_v49, %v501_v49  ;;  %v708_v54 = vmul.f32 %v597_v50, %v597_v50 }
  0xe0   : > { %v503_v51 = vpop.f32.mrf.mxu0  ;;  %v599_v52 = vpop.f32.mrf.mxu1 }
  0xe1   : > { %v724_v55 = vmul.f32 %v503_v51, %v503_v51  ;;  %v740_v56 = vmul.f32 %v599_v52, %v599_v52 }
  0xe2   : > { %v507_v57 = vpop.f32.mrf.mxu0  ;;  %v603_v58 = vpop.f32.mrf.mxu1 }
  0xe3   : > { %v756_v59 = vadd.f32 %v724_v55, %v692_v53  ;;  %v772_v60 = vadd.f32 %v740_v56, %v708_v54  ;;  %v693_v0 = vmul.f32 %v507_v57, %v507_v57  ;;  %v709_v2 = vmul.f32 %v603_v58, %v603_v58 }
  0xe4   : > { %v509_v61 = vpop.f32.mrf.mxu0  ;;  %v605_v62 = vpop.f32.mrf.mxu1 }
  0xe5   : > { %v948_v63 = vadd.f32 1e-07, %v756_v59  ;;  %v996_v1 = vadd.f32 1e-07, %v772_v60  ;;  %v725_v3 = vmul.f32 %v509_v61, %v509_v61  ;;  %v741_v4 = vmul.f32 %v605_v62, %v605_v62 }
  0xe6   : > { %v513_v5 = vpop.f32.mrf.mxu0  ;;  %v609_v6 = vpop.f32.mrf.mxu1  ;;  %v788_v32 = vsub.f32 %v756_v59, %v772_v60  ;;  %v884_v44 = vmul.f32 %v756_v59, %v756_v59 }
  0xe7   : > { %1451 = vlog2.f32 %v948_v63  ;;  %v757_v7 = vadd.f32 %v725_v3, %v693_v0  ;;  %v773_v8 = vadd.f32 %v741_v4, %v709_v2  ;;  %v694_v11 = vmul.f32 %v513_v5, %v513_v5 }
  0xe8   : > { %v515_v9 = vpop.f32.mrf.mxu0  ;;  %v611_v10 = vpop.f32.mrf.mxu1  ;;  %v710_v12 = vmul.f32 %v609_v6, %v609_v6  ;;  %1453 = vlog2.f32 %v996_v1  ;;  %v820_v50 = vmul.f32 %v788_v32, %v788_v32 }
  0xe9   : > { %v726_v13 = vmul.f32 %v515_v9, %v515_v9  ;;  %v742_v14 = vmul.f32 %v611_v10, %v611_v10  ;;  %v949_v15 = vadd.f32 1e-07, %v757_v7  ;;  %v997_v16 = vadd.f32 1e-07, %v773_v8 }
  0xea   : > { %v519_v17 = vpop.f32.mrf.mxu0  ;;  %v615_v18 = vpop.f32.mrf.mxu1  ;;  %v789_v19 = vsub.f32 %v757_v7, %v773_v8  ;;  %v885_v33 = vmul.f32 %v757_v7, %v757_v7 }
  0xeb   : > { %v758_v20 = vadd.f32 %v726_v13, %v694_v11  ;;  %v774_v21 = vadd.f32 %v742_v14, %v710_v12  ;;  %1455 = vlog2.f32 %v949_v15  ;;  %v695_v25 = vmul.f32 %v519_v17, %v519_v17 }
  0xec   : > { %v521_v22 = vpop.f32.mrf.mxu0  ;;  %v617_v23 = vpop.f32.mrf.mxu1  ;;  %1457 = vlog2.f32 %v997_v16  ;;  %v711_v27 = vmul.f32 %v615_v18, %v615_v18  ;;  %v821_v34 = vmul.f32 %v789_v19, %v789_v19  ;;  %v1169_v53 = vadd.f32 %v885_v33, %v884_v44 }
  0xed   : > { %v950_v24 = vadd.f32 1e-07, %v758_v20  ;;  %v998_v26 = vadd.f32 1e-07, %v774_v21  ;;  %v727_v28 = vmul.f32 %v521_v22, %v521_v22  ;;  %v743_v29 = vmul.f32 %v617_v23, %v617_v23 }
  0xee   : > { %v525_v30 = vpop.f32.mrf.mxu0  ;;  %v621_v31 = vpop.f32.mrf.mxu1  ;;  %v790_v35 = vsub.f32 %v758_v20, %v774_v21  ;;  %v886_v45 = vmul.f32 %v758_v20, %v758_v20  ;;  %v1127_v60 = vadd.f32 %v821_v34, %v820_v50 }
  0xef   : > { %1459 = vlog2.f32 %v950_v24  ;;  %v759_v36 = vadd.f32 %v727_v28, %v695_v25  ;;  %v775_v37 = vadd.f32 %v743_v29, %v711_v27  ;;  %v696_v38 = vmul.f32 %v525_v30, %v525_v30 }
  0xf0   : > { %v527_v39 = vpop.f32.mrf.mxu0  ;;  %v623_v40 = vpop.f32.mrf.mxu1  ;;  %1461 = vlog2.f32 %v998_v26  ;;  %v712_v41 = vmul.f32 %v621_v31, %v621_v31  ;;  %v822_v54 = vmul.f32 %v790_v35, %v790_v35  ;;  %v1170_v62 = vadd.f32 %v1169_v53, %v886_v45 }
  0xf1   : > { %v728_v42 = vmul.f32 %v527_v39, %v527_v39  ;;  %v744_v43 = vmul.f32 %v623_v40, %v623_v40  ;;  %v951_v46 = vadd.f32 1e-07, %v759_v36  ;;  %v999_v47 = vadd.f32 1e-07, %v775_v37 }
  0xf2   : > { %v531_v48 = vpop.f32.mrf.mxu0  ;;  %v627_v49 = vpop.f32.mrf.mxu1  ;;  %v791_v55 = vsub.f32 %v759_v36, %v775_v37  ;;  %v887_v59 = vmul.f32 %v759_v36, %v759_v36  ;;  %v1128_v8 = vadd.f32 %v1127_v60, %v822_v54 }
  0xf3   : > { %v760_v51 = vadd.f32 %v728_v42, %v696_v38  ;;  %v776_v52 = vadd.f32 %v744_v43, %v712_v41  ;;  %1463 = vlog2.f32 %v951_v46  ;;  %v697_v0 = vmul.f32 %v531_v48, %v531_v48 }
  0xf4   : > { %v533_v56 = vpop.f32.mrf.mxu0  ;;  %v629_v57 = vpop.f32.mrf.mxu1  ;;  %1465 = vlog2.f32 %v999_v47  ;;  %v713_v4 = vmul.f32 %v627_v49, %v627_v49  ;;  %v823_v9 = vmul.f32 %v791_v55, %v791_v55  ;;  %v1171_v25 = vadd.f32 %v1170_v62, %v887_v59 }
  0xf5   : > { %v1452_v58 = vpop.eup %1451  ;;  %v952_v61 = vadd.f32 1e-07, %v760_v51  ;;  %v1000_v63 = vadd.f32 1e-07, %v776_v52  ;;  %v729_v5 = vmul.f32 %v533_v56, %v533_v56  ;;  %v745_v6 = vmul.f32 %v629_v57, %v629_v57 }
  0xf6   : > { %v537_v1 = vpop.f32.mrf.mxu0  ;;  %v633_v2 = vpop.f32.mrf.mxu1  ;;  %v1735_v7 = vmul.f32 0.6931472, %v1452_v58  ;;  %v888_v13 = vmul.f32 %v760_v51, %v760_v51  ;;  %v792_v26 = vsub.f32 %v760_v51, %v776_v52  ;;  %v1129_v37 = vadd.f32 %v1128_v8, %v823_v9 }
  0xf7   : > { %v1454_v3 = vpop.eup %1453  ;;  %1467 = vlog2.f32 %v952_v61  ;;  %v761_v14 = vadd.f32 %v729_v5, %v697_v0  ;;  %v777_v15 = vadd.f32 %v745_v6, %v713_v4  ;;  %v698_v19 = vmul.f32 %v537_v1, %v537_v1 }
  0xf8   : > { %1469 = vlog2.f32 %v1000_v63  ;;  %v539_v10 = vpop.f32.mrf.mxu0  ;;  %v635_v11 = vpop.f32.mrf.mxu1  ;;  %v1737_v18 = vmul.f32 0.6931472, %v1454_v3  ;;  %v714_v20 = vmul.f32 %v633_v2, %v633_v2  ;;  %v1172_v38 = vadd.f32 %v1171_v25, %v888_v13 }
  0xf9   : > { %v1456_v12 = vpop.eup %1455  ;;  %v730_v16 = vmul.f32 %v539_v10, %v539_v10  ;;  %v746_v21 = vmul.f32 %v635_v11, %v635_v11  ;;  %v953_v27 = vadd.f32 1e-07, %v761_v14  ;;  %v1001_v29 = vadd.f32 1e-07, %v777_v15 }
  0xfa   : > { %v1458_v17 = vpop.eup %1457  ;;  %v543_v22 = vpop.f32.mrf.mxu0  ;;  %v967_v24 = vmul.f32 0.6931472, %v1456_v12  ;;  %v1044_v36 = vsub.f32 %v1735_v7, %v1737_v18  ;;  %v824_v41 = vmul.f32 %v792_v26, %v792_v26  ;;  %v889_v42 = vmul.f32 %v761_v14, %v761_v14 }
  0xfb   : > { %v639_v23 = vpop.f32.mrf.mxu1  ;;  %v1015_v28 = vmul.f32 0.6931472, %v1458_v17  ;;  %v762_v30 = vadd.f32 %v730_v16, %v698_v19  ;;  %v778_v31 = vadd.f32 %v746_v21, %v714_v20  ;;  %1471 = vlog2.f32 %v953_v27 }
  0xfc   : > { %v545_v32 = vpop.f32.mrf.mxu0  ;;  %v1460_v34 = vpop.eup %1459  ;;  %1473 = vlog2.f32 %v1001_v29  ;;  %v793_v47 = vsub.f32 %v761_v14, %v777_v15  ;;  %v699_v48 = vmul.f32 %v543_v22, %v543_v22  ;;  %v715_v57 = vmul.f32 %v639_v23, %v639_v23 }
  0xfd   : > { %v641_v33 = vpop.f32.mrf.mxu1  ;;  %v1462_v35 = vpop.eup %1461  ;;  %v954_v43 = vadd.f32 1e-07, %v762_v30  ;;  %v1002_v44 = vadd.f32 1e-07, %v778_v31  ;;  %v1045_v45 = vsub.f32 %v967_v24, %v1015_v28  ;;  %v969_v46 = vmul.f32 0.6931472, %v1460_v34 }
  0xfe   : > { %v549_v39 = vpop.f32.mrf.mxu0  ;;  %v1017_v52 = vmul.f32 0.6931472, %v1462_v35  ;;  %v794_v53 = vsub.f32 %v762_v30, %v778_v31  ;;  %v731_v54 = vmul.f32 %v545_v32, %v545_v32  ;;  %v747_v58 = vmul.f32 %v641_v33, %v641_v33 }
  0xff   : > { %v645_v40 = vpop.f32.mrf.mxu1  ;;  %1475 = vlog2.f32 %v954_v43  ;;  %v1130_v59 = vadd.f32 %v1129_v37, %v824_v41  ;;  %v1173_v63 = vadd.f32 %v1172_v38, %v889_v42  ;;  %v825_v2 = vmul.f32 %v793_v47, %v793_v47 }
 0x100   : > { %v551_v49 = vpop.f32.mrf.mxu0  ;;  %v1464_v51 = vpop.eup %1463  ;;  %1477 = vlog2.f32 %v1002_v44  ;;  %v763_v0 = vadd.f32 %v731_v54, %v699_v48  ;;  %v890_v3 = vmul.f32 %v762_v30, %v762_v30  ;;  %v779_v4 = vadd.f32 %v747_v58, %v715_v57 }
 0x101   : > { %v647_v50 = vpop.f32.mrf.mxu1  ;;  %v1466_v55 = vpop.eup %1465  ;;  %v971_v56 = vmul.f32 0.6931472, %v1464_v51  ;;  %v732_v5 = vmul.f32 %v551_v49, %v551_v49  ;;  %v1061_v9 = vand.u32 2147483647, %v1045_v45  ;;  %v1046_v10 = vsub.f32 %v969_v46, %v1017_v52 }
 0x102   : > { %v555_v60 = vpop.f32.mrf.mxu0  ;;  %v1019_v62 = vmul.f32 0.6931472, %v1466_v55  ;;  %v826_v11 = vmul.f32 %v794_v53, %v794_v53  ;;  %v700_v12 = vmul.f32 %v549_v39, %v549_v39  ;;  %v955_v15 = vadd.f32 1e-07, %v763_v0 }
 0x103   : > { %v1741_v61 = vpop.f32.mrf.mxu1  ;;  %v716_v16 = vmul.f32 %v645_v40, %v645_v40  ;;  %v795_v20 = vsub.f32 %v763_v0, %v779_v4  ;;  %v1003_v21 = vadd.f32 1e-07, %v779_v4  ;;  %v748_v22 = vmul.f32 %v647_v50, %v647_v50 }
 0x104   : > { %v1468_v1 = vpop.eup %1467  ;;  %v557_v6 = vpop.f32.mrf.mxu0  ;;  %v1047_v13 = vsub.f32 %v971_v56, %v1019_v62  ;;  %v1060_v23 = vand.u32 2147483647, %v1044_v36  ;;  %v1131_v24 = vadd.f32 %v1130_v59, %v825_v2  ;;  %v764_v25 = vadd.f32 %v732_v5, %v700_v12 }
 0x105   : > { %v653_v7 = vpop.f32.mrf.mxu1  ;;  %v1470_v8 = vpop.eup %1469  ;;  %v973_v14 = vmul.f32 0.6931472, %v1468_v1  ;;  %v1062_v28 = vand.u32 2147483647, %v1046_v10  ;;  %v1174_v29 = vadd.f32 %v1173_v63, %v890_v3  ;;  %v891_v30 = vmul.f32 %v763_v0, %v763_v0 }
 0x106   : > { %v561_v17 = vpop.f32.mrf.mxu0  ;;  %v1021_v19 = vmul.f32 0.6931472, %v1470_v8  ;;  %v780_v31 = vadd.f32 %v748_v22, %v716_v16  ;;  %v1211_v33 = vadd.f32 %v1061_v9, %v1060_v23  ;;  %v1063_v34 = vand.u32 2147483647, %v1047_v13 }
 0x107   : > { %v657_v18 = vpop.f32.mrf.mxu1  ;;  %v1132_v35 = vadd.f32 %v1131_v24, %v826_v11  ;;  %1479 = vlog2.f32 %v955_v15  ;;  %v827_v42 = vmul.f32 %v795_v20, %v795_v20  ;;  %v701_v44 = vmul.f32 %v555_v60, %v555_v60 }
 0x108   : > { %v563_v26 = vpop.f32.mrf.mxu0  ;;  %v1472_v32 = vpop.eup %1471  ;;  %v1048_v40 = vsub.f32 %v973_v14, %v1021_v19  ;;  %1481 = vlog2.f32 %v1003_v21  ;;  %v796_v43 = vsub.f32 %v764_v25, %v780_v31  ;;  %v733_v45 = vmul.f32 %v557_v6, %v557_v6 }
 0x109   : > { %v659_v27 = vpop.f32.mrf.mxu1  ;;  %v1474_v39 = vpop.eup %1473  ;;  %v975_v41 = vmul.f32 0.6931472, %v1472_v32  ;;  %v1212_v48 = vadd.f32 %v1211_v33, %v1062_v28  ;;  %v1175_v49 = vadd.f32 %v1174_v29, %v891_v30  ;;  %v956_v50 = vadd.f32 1e-07, %v764_v25 }
 0x10a   : > { %v567_v37 = vpop.f32.mrf.mxu0  ;;  %v1023_v36 = vmul.f32 0.6931472, %v1474_v39  ;;  %v749_v51 = vmul.f32 %v653_v7, %v653_v7  ;;  %v892_v54 = vmul.f32 %v764_v25, %v764_v25  ;;  %v765_v55 = vadd.f32 %v733_v45, %v701_v44 }
 0x10b   : > { %v663_v38 = vpop.f32.mrf.mxu1  ;;  %v734_v56 = vmul.f32 %v563_v26, %v563_v26  ;;  %v1213_v59 = vadd.f32 %v1212_v48, %v1063_v34  ;;  %v1064_v63 = vand.u32 2147483647, %v1048_v40  ;;  %v717_v60 = vmul.f32 %v1741_v61, %v1741_v61 }
 0x10c   : > { %v569_v46 = vpop.f32.mrf.mxu0  ;;  %v1476_v52 = vpop.eup %1475  ;;  %v1049_v53 = vsub.f32 %v975_v41, %v1023_v36  ;;  %v750_v0 = vmul.f32 %v659_v27, %v659_v27  ;;  %v1133_v1 = vadd.f32 %v1132_v35, %v827_v42  ;;  %v828_v2 = vmul.f32 %v796_v43, %v796_v43 }
 0x10d   : > { %v665_v47 = vpop.f32.mrf.mxu1  ;;  %v1478_v62 = vpop.eup %1477  ;;  %v1004_v3 = vadd.f32 1e-07, %v780_v31  ;;  %v702_v4 = vmul.f32 %v561_v17, %v561_v17  ;;  %v1745_v7 = vmul.f32 0.6931472, %v1476_v52  ;;  %1483 = vlog2.f32 %v956_v50 }
 0x10e   : > { %v573_v57 = vpop.f32.mrf.mxu0  ;;  %v781_v8 = vadd.f32 %v749_v51, %v717_v60  ;;  %v718_v9 = vmul.f32 %v657_v18, %v657_v18  ;;  %v1065_v10 = vand.u32 2147483647, %v1049_v53  ;;  %v1747_v11 = vmul.f32 0.6931472, %v1478_v62 }
 0x10f   : > { %v669_v58 = vpop.f32.mrf.mxu1  ;;  %v957_v12 = vadd.f32 1e-07, %v765_v55  ;;  %v766_v13 = vadd.f32 %v734_v56, %v702_v4  ;;  %v1214_v16 = vadd.f32 %v1213_v59, %v1064_v63  ;;  %v1176_v19 = vadd.f32 %v1175_v49, %v892_v54 }
 0x110   : > { %v575_v5 = vpop.f32.mrf.mxu0  ;;  %v782_v61 = vadd.f32 %v750_v0, %v718_v9  ;;  %1485 = vlog2.f32 %v1004_v3  ;;  %v1134_v20 = vadd.f32 %v1133_v1, %v828_v2  ;;  %v893_v22 = vmul.f32 %v765_v55, %v765_v55 }
 0x111   : > { %v671_v6 = vpop.f32.mrf.mxu1  ;;  %v797_v23 = vsub.f32 %v765_v55, %v781_v8  ;;  %v1005_v24 = vadd.f32 1e-07, %v781_v8  ;;  %v703_v25 = vmul.f32 %v567_v37, %v567_v37  ;;  %v1749_v26 = vadd.f32 %v1214_v16, %v1065_v10 }
 0x112   : > { %v579_v14 = vpop.f32.mrf.mxu0  ;;  %v1050_v18 = vsub.f32 %v1745_v7, %v1747_v11  ;;  %1487 = vlog2.f32 %v957_v12  ;;  %v958_v27 = vadd.f32 1e-07, %v766_v13  ;;  %v1006_v29 = vadd.f32 1e-07, %v782_v61 }
 0x113   : > { %v675_v15 = vpop.f32.mrf.mxu1  ;;  %v719_v30 = vmul.f32 %v663_v38, %v663_v38  ;;  %v735_v31 = vmul.f32 %v569_v46, %v569_v46  ;;  %v751_v32 = vmul.f32 %v665_v47, %v665_v47  ;;  %v704_v34 = vmul.f32 %v573_v57, %v573_v57 }
 0x114   : > { %v581_v17 = vpop.f32.mrf.mxu0  ;;  %v1480_v28 = vpop.eup %1479  ;;  %v720_v35 = vmul.f32 %v669_v58, %v669_v58  ;;  %v736_v39 = vmul.f32 %v575_v5, %v575_v5  ;;  %v752_v40 = vmul.f32 %v671_v6, %v671_v6  ;;  %v829_v37 = vmul.f32 %v797_v23, %v797_v23 }
 0x115   : > { %v677_v21 = vpop.f32.mrf.mxu1  ;;  %v1482_v33 = vpop.eup %1481  ;;  %v798_v36 = vsub.f32 %v766_v13, %v782_v61  ;;  %v767_v43 = vadd.f32 %v735_v31, %v703_v25  ;;  %v783_v44 = vadd.f32 %v751_v32, %v719_v30  ;;  %v1177_v45 = vadd.f32 %v1176_v19, %v893_v22 }
 0x116   : > { %v585_v41 = vpop.f32.mrf.mxu0  ;;  %1489 = vlog2.f32 %v1005_v24  ;;  %v768_v48 = vadd.f32 %v736_v39, %v704_v34  ;;  %v784_v49 = vadd.f32 %v752_v40, %v720_v35  ;;  %v979_v50 = vmul.f32 0.6931472, %v1480_v28 }
 0x117   : > { %v681_v42 = vpop.f32.mrf.mxu1  ;;  %v1027_v51 = vmul.f32 0.6931472, %v1482_v33  ;;  %1491 = vlog2.f32 %v958_v27  ;;  %v959_v38 = vadd.f32 1e-07, %v767_v43  ;;  %v894_v46 = vmul.f32 %v766_v13, %v766_v13 }
 0x118   : > { %1493 = vlog2.f32 %v1006_v29  ;;  %v1007_v47 = vadd.f32 1e-07, %v783_v44  ;;  %v960_v52 = vadd.f32 1e-07, %v768_v48  ;;  %v587_v53 = vpop.f32.mrf.mxu0  ;;  %v1135_v55 = vadd.f32 %v1134_v20, %v829_v37 }
 0x119   : > { %v683_v54 = vpop.f32.mrf.mxu1  ;;  %v830_v56 = vmul.f32 %v798_v36, %v798_v36  ;;  %1495 = vlog2.f32 %v959_v38  ;;  %v705_v57 = vmul.f32 %v579_v14, %v579_v14  ;;  %v799_v62 = vsub.f32 %v767_v43, %v783_v44 }
 0x11a   : > { %v1484_v58 = vpop.eup %1483  ;;  %1497 = vlog2.f32 %v1007_v47  ;;  %v1008_v59 = vadd.f32 1e-07, %v784_v49  ;;  %v737_v63 = vmul.f32 %v581_v17, %v581_v17  ;;  %v1051_v60 = vsub.f32 %v979_v50, %v1027_v51  ;;  %v591_v5 = vpop.f32.mrf.mxu0 }
 0x11b   : > { %1499 = vlog2.f32 %v960_v52  ;;  %v721_v0 = vmul.f32 %v675_v15, %v675_v15  ;;  %v753_v1 = vmul.f32 %v677_v21, %v677_v21  ;;  %v1753_v2 = vand.u32 2147483647, %v1050_v18  ;;  %v687_v6 = vpop.f32.mrf.mxu1 }
 0x11c   : > { %v1178_v3 = vadd.f32 %v1177_v45, %v894_v46  ;;  %1501 = vlog2.f32 %v1008_v59  ;;  %v769_v4 = vadd.f32 %v737_v63, %v705_v57  ;;  %v1755_v8 = vmul.f32 0.6931472, %v1484_v58  ;;  %v593_v24 = vpop.f32.mrf.mxu0 }
 0x11d   : > { %v1486_v7 = vpop.eup %1485  ;;  %v1136_v9 = vadd.f32 %v1135_v55, %v830_v56  ;;  %v800_v10 = vsub.f32 %v768_v48, %v784_v49  ;;  %v785_v11 = vadd.f32 %v753_v1, %v721_v0  ;;  %v831_v12 = vmul.f32 %v799_v62, %v799_v62  ;;  %v689_v25 = vpop.f32.mrf.mxu1 }
 0x11e   : > { %v961_v13 = vadd.f32 1e-07, %v769_v4  ;;  %v706_v14 = vmul.f32 %v585_v41, %v585_v41  ;;  %v738_v61 = vmul.f32 %v587_v53, %v587_v53  ;;  %v1757_v15 = vand.u32 2147483647, %v1051_v60 }
 0x11f   : > { %v1488_v16 = vpop.eup %1487  ;;  %v895_v19 = vmul.f32 %v767_v43, %v767_v43  ;;  %v801_v20 = vsub.f32 %v769_v4, %v785_v11  ;;  %v1009_v17 = vadd.f32 1e-07, %v785_v11  ;;  %v722_v21 = vmul.f32 %v681_v42, %v681_v42 }
 0x120   : > { %1503 = vlog2.f32 %v961_v13  ;;  %v770_v22 = vadd.f32 %v738_v61, %v706_v14  ;;  %v754_v23 = vmul.f32 %v683_v54, %v683_v54  ;;  %v1029_v18 = vmul.f32 0.6931472, %v1486_v7 }
 0x121   : > { %v896_v27 = vmul.f32 %v768_v48, %v768_v48  ;;  %v832_v28 = vmul.f32 %v800_v10, %v800_v10  ;;  %1505 = vlog2.f32 %v1009_v17  ;;  %v1137_v29 = vadd.f32 %v1136_v9, %v831_v12 }
 0x122   : > { %v833_v30 = vmul.f32 %v801_v20, %v801_v20  ;;  %v962_v31 = vadd.f32 1e-07, %v770_v22  ;;  %v786_v32 = vadd.f32 %v754_v23, %v722_v21  ;;  %v707_v34 = vmul.f32 %v591_v5, %v591_v5 }
 0x123   : > { %v1490_v33 = vpop.eup %1489  ;;  %v723_v35 = vmul.f32 %v687_v6, %v687_v6  ;;  %v739_v39 = vmul.f32 %v593_v24, %v593_v24  ;;  %v755_v40 = vmul.f32 %v689_v25, %v689_v25  ;;  %v1179_v37 = vadd.f32 %v1178_v3, %v895_v19 }
 0x124   : > { %v1492_v41 = vpop.eup %1491  ;;  %1507 = vlog2.f32 %v962_v31  ;;  %v1010_v42 = vadd.f32 1e-07, %v786_v32  ;;  %v802_v36 = vsub.f32 %v770_v22, %v786_v32  ;;  %v983_v44 = vmul.f32 0.6931472, %v1488_v16 }
 0x125   : > { %v1494_v43 = vpop.eup %1493  ;;  %v771_v45 = vadd.f32 %v739_v39, %v707_v34  ;;  %v787_v48 = vadd.f32 %v755_v40, %v723_v35  ;;  %v1138_v49 = vadd.f32 %v1137_v29, %v832_v28  ;;  %v1031_v51 = vmul.f32 0.6931472, %v1490_v33 }
 0x126   : > { %v1496_v50 = vpop.eup %1495  ;;  %v897_v38 = vmul.f32 %v769_v4, %v769_v4  ;;  %1509 = vlog2.f32 %v1010_v42  ;;  %v834_v46 = vmul.f32 %v802_v36, %v802_v36  ;;  %v1052_v57 = vsub.f32 %v1755_v8, %v1029_v18 }
 0x127   : > { %v1498_v47 = vpop.eup %1497  ;;  %v963_v52 = vadd.f32 1e-07, %v771_v45  ;;  %v1011_v53 = vadd.f32 1e-07, %v787_v48  ;;  %v803_v54 = vsub.f32 %v771_v45, %v787_v48  ;;  %v1139_v55 = vadd.f32 %v1138_v49, %v833_v30 }
 0x128   : > { %v1500_v56 = vpop.eup %1499  ;;  %v985_v58 = vmul.f32 0.6931472, %v1492_v41  ;;  %v1033_v62 = vmul.f32 0.6931472, %v1494_v43  ;;  %v898_v59 = vmul.f32 %v770_v22, %v770_v22  ;;  %v1180_v1 = vadd.f32 %v1179_v37, %v896_v27 }
 0x129   : > { %v1502_v63 = vpop.eup %1501  ;;  %1511 = vlog2.f32 %v963_v52  ;;  %v835_v60 = vmul.f32 %v803_v54, %v803_v54  ;;  %v1140_v0 = vadd.f32 %v1139_v55, %v834_v46  ;;  %v1053_v3 = vsub.f32 %v983_v44, %v1031_v51 }
 0x12a   : > { %v987_v4 = vmul.f32 0.6931472, %v1496_v50  ;;  %v1035_v5 = vmul.f32 0.6931472, %v1498_v47  ;;  %1513 = vlog2.f32 %v1011_v53  ;;  %v1216_v6 = vadd.f32 %v1749_v26, %v1753_v2 }
 0x12b   : > { %v1141_v7 = vadd.f32 %v1140_v0, %v835_v60  ;;  %v899_v9 = vmul.f32 %v771_v45, %v771_v45  ;;  %v1181_v10 = vadd.f32 %v1180_v1, %v897_v38  ;;  %v1068_v11 = vand.u32 2147483647, %v1052_v57 }
 0x12c   : > { %v1054_v8 = vsub.f32 %v985_v58, %v1033_v62  ;;  %v1037_v12 = vmul.f32 0.6931472, %v1502_v63  ;;  %v989_v13 = vmul.f32 0.6931472, %v1500_v56  ;;  %v1217_v19 = vadd.f32 %v1216_v6, %v1757_v15 }
 0x12d   : > { %v1504_v14 = vpop.eup %1503  ;;  %1142 = vadd.xlane.f32.xlu0 %v1141_v7  ;;  %v1182_v61 = vadd.f32 %v1181_v10, %v898_v59  ;;  %v1069_v20 = vand.u32 2147483647, %v1053_v3  ;;  %v1055_v21 = vsub.f32 %v987_v4, %v1035_v5 }
 0x12e   : > { %v1506_v16 = vpop.eup %1505  ;;  %v991_v17 = vmul.f32 0.6931472, %v1504_v14  ;;  %v1218_v24 = vadd.f32 %v1217_v19, %v1068_v11  ;;  %v1070_v26 = vand.u32 2147483647, %v1054_v8  ;;  %v1056_v2 = vsub.f32 %v989_v13, %v1037_v12 }
 0x12f   : > { %v1183_v22 = vadd.f32 %v1182_v61, %v899_v9  ;;  %v1039_v23 = vmul.f32 0.6931472, %v1506_v16  ;;  %v1071_v28 = vand.u32 2147483647, %v1055_v21 }
 0x130   : > { %v1219_v29 = vadd.f32 %v1218_v24, %v1069_v20  ;;  %v1072_v32 = vand.u32 2147483647, %v1056_v2 }
 0x131   : > { %v1508_v25 = vpop.eup %1507  ;;  %1184 = vadd.xlane.f32.xlu0 %v1183_v22  ;;  %v1057_v27 = vsub.f32 %v991_v17, %v1039_v23 }
 0x132   : > { %v993_v18 = vmul.f32 0.6931472, %v1508_v25  ;;  %v1220_v33 = vadd.f32 %v1219_v29, %v1070_v26 }
 0x133   : > { %v1510_v30 = vpop.eup %1509  ;;  %v1073_v35 = vand.u32 2147483647, %v1057_v27 }
 0x134   : > { %v1041_v31 = vmul.f32 0.6931472, %v1510_v30  ;;  %v1221_v39 = vadd.f32 %v1220_v33, %v1071_v28 }
 0x136   : > { %v1512_v34 = vpop.eup %1511  ;;  %v1058_v15 = vsub.f32 %v993_v18, %v1041_v31  ;;  %v1222_v36 = vadd.f32 %v1221_v39, %v1072_v32 }
 0x137   : > { %v1514_v40 = vpop.eup %1513  ;;  %v995_v41 = vmul.f32 0.6931472, %v1512_v34 }
 0x138   : > { %v1043_v37 = vmul.f32 0.6931472, %v1514_v40  ;;  %v1074_v42 = vand.u32 2147483647, %v1058_v15  ;;  %v1223_v44 = vadd.f32 %v1222_v36, %v1073_v35 }
 0x13a   : > { %v1059_v43 = vsub.f32 %v995_v41, %v1043_v37  ;;  %v1224_v48 = vadd.f32 %v1223_v44, %v1074_v42 }
 0x13c   : > { %v1075_v45 = vand.u32 2147483647, %v1059_v43 }
 0x13e   : > { %v1225_v49 = vadd.f32 %v1224_v48, %v1075_v45 }
 0x140   : > { %1226 = vadd.xlane.f32.xlu1 %v1225_v49 }
 0x1b6   : > { %v1143_v50 = vpop.xlane.xlu0 %1142 }
 0x1b7   : > { %v1144_v51 = vrot.slane %v1143_v50, 4 }
 0x1b9   : > { %v1145_v38 = vadd.f32 %v1144_v51, %v1143_v50 }
 0x1ba   : > { %v1185_v46 = vpop.xlane.xlu0 %1184 }
 0x1bb   : > { %v1146_v47 = vrot.slane %v1145_v38, 2  ;;  %v1186_v52 = vrot.slane %v1185_v46, 4 }
 0x1bd   : > { %v1187_v53 = vadd.f32 %v1186_v52, %v1185_v46  ;;  %v1147_v54 = vadd.f32 %v1146_v47, %v1145_v38 }
 0x1bf   : > { %v1188_v55 = vrot.slane %v1187_v53, 2  ;;  %v1148_v56 = vrot.slane %v1147_v54, 1 }
 0x1c1   : > { %v1189_v57 = vadd.f32 %v1188_v55, %v1187_v53  ;;  %v1149_v58 = vadd.f32 %v1148_v56, %v1147_v54 }
 0x1c3   : > { %1420 = vpush %v1149_v58  ;;  %v1190_v62 = vrot.slane %v1189_v57, 1 }
 0x1c5   : > { %v1191_v59 = vadd.f32 %v1190_v62, %v1189_v57 }
 0x1c7   : > { %1422 = vpush %v1191_v59 }
 0x1c9   : > { %v1227_v63 = vpop.xlane.xlu1 %1226 }
 0x1ca   : > { %v1228_v60 = vrot.slane %v1227_v63, 4 }
 0x1cc   : > { %v1229_v0 = vadd.f32 %v1228_v60, %v1227_v63 }
 0x1ce   : > { %v1230_v1 = vrot.slane %v1229_v0, 2 }
 0x1d0   : > { %v1231_v3 = vadd.f32 %v1230_v1, %v1229_v0 }
 0x1d2   : > { %v1232_v4 = vrot.slane %v1231_v3, 1 }
 0x1d4   : > { %v1233_v5 = vadd.f32 %v1232_v4, %v1231_v3 }
 0x1d6   : > { %1424 = vpush %v1233_v5 }
 0x1f4   : > { %s1421_s12 = spop %1420 }
 0x1f5   : > { %v1151_v6 = vstv %s1421_s12 }
 0x1f6   : > { %1152 = vst [vmem:[%s229_s11] sm:$0xff] %v1151_v6 }
 0x1f8   : > { %s1423_s20 = spop %1422 }
 0x1f9   : > { %v1193_v7 = vstv %s1423_s20 }
 0x1fa   : > { %1194 = vst [vmem:[%s233_s19] sm:$0xff] %v1193_v7 }
 0x207   : > { %s1425_s24 = spop %1424 }
 0x208   : > { %v1235_v9 = vstv %s1425_s24 }
 0x209   : > { %1236 = vst [vmem:[%s237_s23] sm:$0xff] %v1235_v9 }
 0x20a PF: > { %s15_s17 = sadd.s32 1, %s1537_s17   ;;  %s1788_s15 = smov %s1533_s16 }
 0x20b   : > { %p12_p6 = scmp.ge.s32.totalorder %s15_s17, 4   ;;  %s1789_s16 = smov %s1791_s18 }
 0x20d   :  { %14 = sbr.rel (!%p12_p6) target bundleno = 2 (0x2), region = 90 }

</bundles_post_ra>
